<compile_context>
chip_gen: v7x
topology: tpu7x:2x2x1
jax: 0.10.0
libtpu: 0.0.40
codegen_flags: <defaults>
</compile_context>

<pallas_src>
import functools
import math

import numpy as np
import jax
import jax.numpy as jnp
from jax import lax
from jax.experimental import pallas as pl
from jax.experimental.pallas import tpu as pltpu

LN_EPS = 1e-5  # PyTorch nn.LayerNorm default


# ----------------------------- fused FFTBlock kernel --------------------------------------
def _fft_block_kernel(
    x_ref,                       # (1, T, D)  f32 activation block for one batch item
    g1_ref, b1_ref,              # (1, D)     f32 LayerNorm1 gamma / beta
    wq_ref, wk_ref, wv_ref,      # (D, D)     bf16 pre-transposed Q/K/V projection weights
    bq_ref, bk_ref, bv_ref,      # (1, D)     f32 Q/K/V biases
    wo3_ref, bo_ref,             # (n_head, hd, D) bf16 out-proj weight (head-major), (1, D) f32 bias
    g2_ref, b2_ref,              # (1, D)     f32 LayerNorm2 gamma / beta
    w1_ref, bf1_ref,             # (D, d_ff) bf16, (1, d_ff) f32  FFN layer 1
    w2_ref, bf2_ref,             # (d_ff, D) bf16, (1, D) f32     FFN layer 2
    o_ref,                       # (1, T, D)  output block
    qh_ref, kh_ref, vh_ref,      # (n_head, T, hd) bf16 head-major scratch
    acc_ref,                     # (T, D) f32 attention-output accumulator scratch
    *, n_head: int,
):
    f32 = jnp.float32
    bf16 = jnp.bfloat16

    x = x_ref[0].astype(f32)                       # (T, D)
    T, D = x.shape
    hd = D // n_head
    scale = 1.0 / math.sqrt(hd)

    def layer_norm(v, g, b):
        # Single-pass stats: sum and sum-of-squares reductions are independent
        # (var = E[x^2] - mean^2), halving the serialized XLU reduction chain.
        mean = jnp.mean(v, axis=-1, keepdims=True)
        mean_sq = jnp.mean(v * v, axis=-1, keepdims=True)
        var = mean_sq - mean * mean
        return (v - mean) * lax.rsqrt(var + LN_EPS) * g + b

    # ---------------- sub-layer 1: pre-LN multi-head self-attention + residual -------------
    h = layer_norm(x, g1_ref[0].astype(f32), b1_ref[0].astype(f32)).astype(bf16)

    # bf16 x bf16 -> f32 accumulate (native single-pass MXU path; no HIGHEST emulation).
    q = jnp.dot(h, wq_ref[...], preferred_element_type=f32) + bq_ref[0]
    k = jnp.dot(h, wk_ref[...], preferred_element_type=f32) + bk_ref[0]
    v = jnp.dot(h, wv_ref[...], preferred_element_type=f32) + bv_ref[0]

    # Scatter heads into head-major VMEM scratch (static, one-time, small) so the
    # attention loop's dynamic indexing lands on the leading (untiled) axis only.
    for hh in range(n_head):
        sl = slice(hh * hd, (hh + 1) * hd)
        qh_ref[hh] = q[:, sl].astype(bf16)
        kh_ref[hh] = k[:, sl].astype(bf16)
        vh_ref[hh] = v[:, sl].astype(bf16)

    acc_ref[...] = jnp.zeros_like(acc_ref)

    def head_body(hh, carry):
        qh = qh_ref[hh]                            # (T, hd) bf16
        kh = kh_ref[hh]
        vh = vh_ref[hh]
        # Contract last dim with last dim: no explicit kh.T transpose.
        s = lax.dot_general(qh, kh, (((1,), (1,)), ((), ())),
                            preferred_element_type=f32) * scale          # (T, T) f32
        m = jnp.max(s, axis=-1, keepdims=True)
        p = jnp.exp(s - m)                                               # unnormalized
        denom = jnp.sum(p, axis=-1, keepdims=True)                       # (T, 1)
        ctx = jnp.dot(p.astype(bf16), vh, preferred_element_type=f32)    # (T, hd)
        # Deferred softmax normalization: O(T*hd) multiplies + EUP reciprocal.
        ctx = ctx * pl.reciprocal(denom, approx=True)
        # Per-head slice of the out-projection, accumulated in f32 VMEM scratch.
        acc_ref[...] += jnp.dot(ctx.astype(bf16), wo3_ref[hh],
                                preferred_element_type=f32)              # (T, D)
        return carry

    lax.fori_loop(0, n_head, head_body, 0)

    x1 = x + acc_ref[...] + bo_ref[0]              # residual 1 (dropout == identity)

    # ---------------- sub-layer 2: pre-LN position-wise feed-forward + residual ------------
    h2 = layer_norm(x1, g2_ref[0].astype(f32), b2_ref[0].astype(f32)).astype(bf16)
    ff = jnp.dot(h2, w1_ref[...], preferred_element_type=f32) + bf1_ref[0]
    ff = jnp.maximum(ff, 0.0).astype(bf16)
    ff = jnp.dot(ff, w2_ref[...], preferred_element_type=f32) + bf2_ref[0]

    o_ref[0] = (x1 + ff).astype(o_ref.dtype)       # residual 2 (dropout == identity)


def _vmem_limit_bytes() -> int:
    """Per-generation VMEM budget: physical capacity minus ~16 MiB headroom
    (v5e/v6e 128 MiB -> ~112 MiB; v7x 64 MiB -> ~48 MiB)."""
    cap = None
    try:
        cap = int(pltpu.get_tpu_info().vmem_capacity_bytes)
    except Exception:
        cap = None
    if not cap or cap <= 0:
        cap = 64 * 1024 * 1024  # conservative fallback (v7x per-TC)
    return max(32 * 1024 * 1024, cap - 16 * 1024 * 1024)


def fft_block_forward(x, params, n_head):
    """x: (B, T, d_model) f32. Returns (B, T, d_model)."""
    B, T, D = x.shape
    d_ff = params["w1_t"].shape[1]
    hd = D // n_head
    wo3 = params["wo_t"].reshape(n_head, hd, D)    # head-major out-proj weight (bf16)

    def resident(shape):
        nd = len(shape)
        return pl.BlockSpec(shape, lambda b, _nd=nd: (0,) * _nd)   # grid-constant weight

    in_specs = [
        pl.BlockSpec((1, T, D), lambda b: (b, 0, 0)),              # x, one batch per step
        resident((1, D)), resident((1, D)),                        # ln1 gamma/beta
        resident((D, D)), resident((D, D)), resident((D, D)),      # Wq_t, Wk_t, Wv_t (bf16)
        resident((1, D)), resident((1, D)), resident((1, D)),      # bq, bk, bv
        resident((n_head, hd, D)), resident((1, D)),               # Wo (head-major), bo
        resident((1, D)), resident((1, D)),                        # ln2 gamma/beta
        resident((D, d_ff)), resident((1, d_ff)),                  # W1_t, b1
        resident((d_ff, D)), resident((1, D)),                     # W2_t, b2
    ]
    out_specs = pl.BlockSpec((1, T, D), lambda b: (b, 0, 0))

    kernel = functools.partial(_fft_block_kernel, n_head=n_head)
    return pl.pallas_call(
        kernel,
        out_shape=jax.ShapeDtypeStruct((B, T, D), x.dtype),
        grid=(B,),
        in_specs=in_specs,
        out_specs=out_specs,
        scratch_shapes=[
            pltpu.VMEM((n_head, T, hd), jnp.bfloat16),   # q, head-major
            pltpu.VMEM((n_head, T, hd), jnp.bfloat16),   # k, head-major
            pltpu.VMEM((n_head, T, hd), jnp.bfloat16),   # v, head-major
            pltpu.VMEM((T, D), jnp.float32),             # attention accumulator
        ],
        compiler_params=pltpu.CompilerParams(
            dimension_semantics=("parallel",),            # shard batch across TCs on v7x
            vmem_limit_bytes=_vmem_limit_bytes(),         # per-generation VMEM budget
        ),
    )(
        x,
        params["g1"], params["b1"],
        params["wq_t"], params["wk_t"], params["wv_t"],
        params["bq"], params["bk"], params["bv"],
        wo3, params["bo"],
        params["g2"], params["b2"],
        params["w1_t"], params["bf1"],
        params["w2_t"], params["bf2"],
    )


# ----------------------------- module wrapper ---------------------------------------------
class FFTBlock:
    def __init__(self, d_model: int, n_head: int, d_ff: int, dropout: float = 0.1, key=None):
        assert d_model % n_head == 0
        if key is None:
            key = jax.random.PRNGKey(0)
        ks = jax.random.split(key, 16)
        sd = 1.0 / math.sqrt(d_model)
        sf = 1.0 / math.sqrt(d_ff)
        f32, bf16 = jnp.float32, jnp.bfloat16
        self.n_head = n_head
        self.d_model = d_model
        self.d_ff = d_ff
        # Big weight matrices are stored pre-transposed (in, out) AND in bf16 so the
        # kernel streams half the bytes and feeds the MXU's native bf16 path.
        # Biases / LN affine params stay in f32 (added in f32 inside the kernel).
        self.params = {
            "g1": 1.0 + 0.1 * jax.random.normal(ks[0], (1, d_model), f32),
            "b1": 0.1 * jax.random.normal(ks[1], (1, d_model), f32),
            "wq_t": (sd * jax.random.normal(ks[2], (d_model, d_model), f32)).astype(bf16),
            "wk_t": (sd * jax.random.normal(ks[3], (d_model, d_model), f32)).astype(bf16),
            "wv_t": (sd * jax.random.normal(ks[4], (d_model, d_model), f32)).astype(bf16),
            "bq": 0.02 * jax.random.normal(ks[5], (1, d_model), f32),
            "bk": 0.02 * jax.random.normal(ks[6], (1, d_model), f32),
            "bv": 0.02 * jax.random.normal(ks[7], (1, d_model), f32),
            "wo_t": (sd * jax.random.normal(ks[8], (d_model, d_model), f32)).astype(bf16),
            "bo": 0.02 * jax.random.normal(ks[9], (1, d_model), f32),
            "g2": 1.0 + 0.1 * jax.random.normal(ks[10], (1, d_model), f32),
            "b2": 0.1 * jax.random.normal(ks[11], (1, d_model), f32),
            "w1_t": (sd * jax.random.normal(ks[12], (d_model, d_ff), f32)).astype(bf16),
            "bf1": 0.02 * jax.random.normal(ks[13], (1, d_ff), f32),
            "w2_t": (sf * jax.random.normal(ks[14], (d_ff, d_model), f32)).astype(bf16),
            "bf2": 0.02 * jax.random.normal(ks[15], (1, d_model), f32),
        }

    def params_np(self):
        # Dequantized (f32) copies of the exact stored values, for the numpy reference.
        return {k: np.asarray(jnp.asarray(v, jnp.float32)) for k, v in self.params.items()}

    def __call__(self, x):
        return fft_block_forward(x, self.params, self.n_head)


# ----------------------------- pure-numpy reference (PyTorch semantics, eval mode) --------
def reference_forward(x, p, n_head):
    x = np.asarray(x, np.float32)
    B, T, D = x.shape
    hd = D // n_head

    def ln(v, g, b):
        mu = v.mean(-1, keepdims=True)
        var = ((v - mu) ** 2).mean(-1, keepdims=True)
        return (v - mu) / np.sqrt(var + LN_EPS) * g + b

    h = ln(x, p["g1"], p["b1"])
    q = h @ p["wq_t"] + p["bq"]
    k = h @ p["wk_t"] + p["bk"]
    v = h @ p["wv_t"] + p["bv"]

    attn = np.zeros_like(x)
    for b in range(B):
        ctxs = []
        for hh in range(n_head):
            sl = slice(hh * hd, (hh + 1) * hd)
            qh, kh, vh = q[b][:, sl], k[b][:, sl], v[b][:, sl]
            s = (qh @ kh.T) / math.sqrt(hd)
            s = s - s.max(-1, keepdims=True)
            pm = np.exp(s)
            pm = pm / pm.sum(-1, keepdims=True)
            ctxs.append(pm @ vh)
        attn[b] = np.concatenate(ctxs, -1) @ p["wo_t"] + p["bo"]

    x1 = x + attn
    h2 = ln(x1, p["g2"], p["b2"])
    ff = np.maximum(h2 @ p["w1_t"] + p["bf1"], 0.0) @ p["w2_t"] + p["bf2"]
    return x1 + ff


if __name__ == "__main__":
    key = jax.random.PRNGKey(0)
    kx, kp = jax.random.split(key)

    # d_model = 128 keeps the output BlockSpec lane-dense (feedback item on (8,128) tiling).
    B, T, d_model, n_head, d_ff = 2, 16, 128, 4, 256
    x = jax.random.normal(kx, (B, T, d_model), jnp.float32)

    block = FFTBlock(d_model, n_head, d_ff, dropout=0.1, key=kp)
    y = jax.block_until_ready(block(x))

    y_ref = reference_forward(np.asarray(x), block.params_np(), n_head)
    assert y.shape == (B, T, d_model), (y.shape, (B, T, d_model))
    y_np = np.asarray(y, np.float32)
    err = float(np.max(np.abs(y_np - y_ref)))
    # Single-pass bf16 MXU operands (f32 accumulate) vs. a pure-f32 numpy reference:
    # tolerance loosened accordingly (review acknowledged this trade-off).
    assert np.allclose(y_np, y_ref, atol=5e-2, rtol=5e-2), f"max abs err {err}"

    print("KERNEL_OK")
</pallas_src>

<mosaic_0001>
module attributes {stable_mosaic.version = 11 : i64} {
  func.func @_fft_block_kernel(%arg0: i32, %arg1: memref<1x16x128xf32, #tpu.memory_space<vmem>>, %arg2: memref<1x128xf32, #tpu.memory_space<vmem>>, %arg3: memref<1x128xf32, #tpu.memory_space<vmem>>, %arg4: memref<128x128xbf16, #tpu.memory_space<vmem>>, %arg5: memref<128x128xbf16, #tpu.memory_space<vmem>>, %arg6: memref<128x128xbf16, #tpu.memory_space<vmem>>, %arg7: memref<1x128xf32, #tpu.memory_space<vmem>>, %arg8: memref<1x128xf32, #tpu.memory_space<vmem>>, %arg9: memref<1x128xf32, #tpu.memory_space<vmem>>, %arg10: memref<4x32x128xbf16, #tpu.memory_space<vmem>>, %arg11: memref<1x128xf32, #tpu.memory_space<vmem>>, %arg12: memref<1x128xf32, #tpu.memory_space<vmem>>, %arg13: memref<1x128xf32, #tpu.memory_space<vmem>>, %arg14: memref<128x256xbf16, #tpu.memory_space<vmem>>, %arg15: memref<1x256xf32, #tpu.memory_space<vmem>>, %arg16: memref<256x128xbf16, #tpu.memory_space<vmem>>, %arg17: memref<1x128xf32, #tpu.memory_space<vmem>>, %arg18: memref<1x16x128xf32, #tpu.memory_space<vmem>>, %arg19: memref<4x16x32xbf16, #tpu.memory_space<vmem>>, %arg20: memref<4x16x32xbf16, #tpu.memory_space<vmem>>, %arg21: memref<4x16x32xbf16, #tpu.memory_space<vmem>>, %arg22: memref<16x128xf32, #tpu.memory_space<vmem>>) attributes {dimension_semantics = [#tpu.dimension_semantics<parallel>], iteration_bounds = array<i64: 2>, scalar_prefetch = 0 : i64, scratch_operands = 4 : i64, tpu.core_type = #tpu.core_type<tc>, window_params = [{transform_indices = @transform_0, window_bounds = array<i64: 1, 16, 128>}, {pipeline_mode = #tpu.pipeline_mode<synchronous>, transform_indices = @transform_1, window_bounds = array<i64: 1, 128>}, {pipeline_mode = #tpu.pipeline_mode<synchronous>, transform_indices = @transform_2, window_bounds = array<i64: 1, 128>}, {pipeline_mode = #tpu.pipeline_mode<synchronous>, transform_indices = @transform_3, window_bounds = array<i64: 128, 128>}, {pipeline_mode = #tpu.pipeline_mode<synchronous>, transform_indices = @transform_4, window_bounds = array<i64: 128, 128>}, {pipeline_mode = #tpu.pipeline_mode<synchronous>, transform_indices = @transform_5, window_bounds = array<i64: 128, 128>}, {pipeline_mode = #tpu.pipeline_mode<synchronous>, transform_indices = @transform_6, window_bounds = array<i64: 1, 128>}, {pipeline_mode = #tpu.pipeline_mode<synchronous>, transform_indices = @transform_7, window_bounds = array<i64: 1, 128>}, {pipeline_mode = #tpu.pipeline_mode<synchronous>, transform_indices = @transform_8, window_bounds = array<i64: 1, 128>}, {pipeline_mode = #tpu.pipeline_mode<synchronous>, transform_indices = @transform_9, window_bounds = array<i64: 4, 32, 128>}, {pipeline_mode = #tpu.pipeline_mode<synchronous>, transform_indices = @transform_10, window_bounds = array<i64: 1, 128>}, {pipeline_mode = #tpu.pipeline_mode<synchronous>, transform_indices = @transform_11, window_bounds = array<i64: 1, 128>}, {pipeline_mode = #tpu.pipeline_mode<synchronous>, transform_indices = @transform_12, window_bounds = array<i64: 1, 128>}, {pipeline_mode = #tpu.pipeline_mode<synchronous>, transform_indices = @transform_13, window_bounds = array<i64: 128, 256>}, {pipeline_mode = #tpu.pipeline_mode<synchronous>, transform_indices = @transform_14, window_bounds = array<i64: 1, 256>}, {pipeline_mode = #tpu.pipeline_mode<synchronous>, transform_indices = @transform_15, window_bounds = array<i64: 256, 128>}, {pipeline_mode = #tpu.pipeline_mode<synchronous>, transform_indices = @transform_16, window_bounds = array<i64: 1, 128>}, {transform_indices = @transform_17, window_bounds = array<i64: 1, 16, 128>}]} {
    %c0 = arith.constant 0 : index
    %c0_0 = arith.constant 0 : index
    %c0_1 = arith.constant 0 : index
    %0 = vector.load %arg1[%c0, %c0_0, %c0_1] : memref<1x16x128xf32, #tpu.memory_space<vmem>>, vector<1x16x128xf32>
    %1 = vector.shape_cast %0 : vector<1x16x128xf32> to vector<16x128xf32>
    %c0_2 = arith.constant 0 : index
    %c0_3 = arith.constant 0 : index
    %2 = vector.load %arg2[%c0_2, %c0_3] : memref<1x128xf32, #tpu.memory_space<vmem>>, vector<1x128xf32>
    %3 = vector.shape_cast %2 : vector<1x128xf32> to vector<128xf32>
    %c0_4 = arith.constant 0 : index
    %c0_5 = arith.constant 0 : index
    %4 = vector.load %arg3[%c0_4, %c0_5] : memref<1x128xf32, #tpu.memory_space<vmem>>, vector<1x128xf32>
    %5 = vector.shape_cast %4 : vector<1x128xf32> to vector<128xf32>
    %cst = arith.constant dense<0.000000e+00> : vector<16xf32>
    %6 = vector.multi_reduction <add>, %1, %cst [1] : vector<16x128xf32> to vector<16xf32>
    %7 = vector.shape_cast %6 : vector<16xf32> to vector<16x1xf32>
    %cst_6 = arith.constant 1.280000e+02 : f32
    %8 = vector.broadcast %cst_6 : f32 to vector<16x1xf32>
    %9 = arith.divf %7, %8 : vector<16x1xf32>
    %10 = arith.mulf %1, %1 : vector<16x128xf32>
    %cst_7 = arith.constant dense<0.000000e+00> : vector<16xf32>
    %11 = vector.multi_reduction <add>, %10, %cst_7 [1] : vector<16x128xf32> to vector<16xf32>
    %12 = vector.shape_cast %11 : vector<16xf32> to vector<16x1xf32>
    %cst_8 = arith.constant 1.280000e+02 : f32
    %13 = vector.broadcast %cst_8 : f32 to vector<16x1xf32>
    %14 = arith.divf %12, %13 : vector<16x1xf32>
    %15 = arith.mulf %9, %9 : vector<16x1xf32>
    %16 = arith.subf %14, %15 : vector<16x1xf32>
    %17 = vector.broadcast %9 : vector<16x1xf32> to vector<16x128xf32>
    %18 = arith.subf %1, %17 : vector<16x128xf32>
    %cst_9 = arith.constant 9.99999974E-6 : f32
    %19 = vector.broadcast %cst_9 : f32 to vector<16x1xf32>
    %20 = arith.addf %16, %19 : vector<16x1xf32>
    %21 = math.rsqrt %20 : vector<16x1xf32>
    %22 = vector.broadcast %21 : vector<16x1xf32> to vector<16x128xf32>
    %23 = arith.mulf %18, %22 : vector<16x128xf32>
    %24 = vector.shape_cast %3 : vector<128xf32> to vector<1x128xf32>
    %25 = vector.broadcast %24 : vector<1x128xf32> to vector<16x128xf32>
    %26 = arith.mulf %23, %25 : vector<16x128xf32>
    %27 = vector.shape_cast %5 : vector<128xf32> to vector<1x128xf32>
    %28 = vector.broadcast %27 : vector<1x128xf32> to vector<16x128xf32>
    %29 = arith.addf %26, %28 : vector<16x128xf32>
    %30 = arith.truncf %29 : vector<16x128xf32> to vector<16x128xbf16>
    %c0_10 = arith.constant 0 : index
    %c0_11 = arith.constant 0 : index
    %31 = vector.load %arg4[%c0_10, %c0_11] : memref<128x128xbf16, #tpu.memory_space<vmem>>, vector<128x128xbf16>
    %cst_12 = arith.constant dense<0.000000e+00> : vector<16x128xf32>
    %32 = tpu.matmul %30, %31, %cst_12 {dimension_numbers = #tpu.dot_dimension_numbers<[1], [0], [0], [1], [0, 0, 1, 1], [], []>} : vector<16x128xbf16>, vector<128x128xbf16>, vector<16x128xf32> -> vector<16x128xf32>
    %c0_13 = arith.constant 0 : index
    %c0_14 = arith.constant 0 : index
    %33 = vector.load %arg7[%c0_13, %c0_14] : memref<1x128xf32, #tpu.memory_space<vmem>>, vector<1x128xf32>
    %34 = vector.shape_cast %33 : vector<1x128xf32> to vector<128xf32>
    %35 = vector.shape_cast %34 : vector<128xf32> to vector<1x128xf32>
    %36 = vector.broadcast %35 : vector<1x128xf32> to vector<16x128xf32>
    %37 = arith.addf %32, %36 : vector<16x128xf32>
    %c0_15 = arith.constant 0 : index
    %c0_16 = arith.constant 0 : index
    %38 = vector.load %arg5[%c0_15, %c0_16] : memref<128x128xbf16, #tpu.memory_space<vmem>>, vector<128x128xbf16>
    %cst_17 = arith.constant dense<0.000000e+00> : vector<16x128xf32>
    %39 = tpu.matmul %30, %38, %cst_17 {dimension_numbers = #tpu.dot_dimension_numbers<[1], [0], [0], [1], [0, 0, 1, 1], [], []>} : vector<16x128xbf16>, vector<128x128xbf16>, vector<16x128xf32> -> vector<16x128xf32>
    %c0_18 = arith.constant 0 : index
    %c0_19 = arith.constant 0 : index
    %40 = vector.load %arg8[%c0_18, %c0_19] : memref<1x128xf32, #tpu.memory_space<vmem>>, vector<1x128xf32>
    %41 = vector.shape_cast %40 : vector<1x128xf32> to vector<128xf32>
    %42 = vector.shape_cast %41 : vector<128xf32> to vector<1x128xf32>
    %43 = vector.broadcast %42 : vector<1x128xf32> to vector<16x128xf32>
    %44 = arith.addf %39, %43 : vector<16x128xf32>
    %c0_20 = arith.constant 0 : index
    %c0_21 = arith.constant 0 : index
    %45 = vector.load %arg6[%c0_20, %c0_21] : memref<128x128xbf16, #tpu.memory_space<vmem>>, vector<128x128xbf16>
    %cst_22 = arith.constant dense<0.000000e+00> : vector<16x128xf32>
    %46 = tpu.matmul %30, %45, %cst_22 {dimension_numbers = #tpu.dot_dimension_numbers<[1], [0], [0], [1], [0, 0, 1, 1], [], []>} : vector<16x128xbf16>, vector<128x128xbf16>, vector<16x128xf32> -> vector<16x128xf32>
    %c0_23 = arith.constant 0 : index
    %c0_24 = arith.constant 0 : index
    %47 = vector.load %arg9[%c0_23, %c0_24] : memref<1x128xf32, #tpu.memory_space<vmem>>, vector<1x128xf32>
    %48 = vector.shape_cast %47 : vector<1x128xf32> to vector<128xf32>
    %49 = vector.shape_cast %48 : vector<128xf32> to vector<1x128xf32>
    %50 = vector.broadcast %49 : vector<1x128xf32> to vector<16x128xf32>
    %51 = arith.addf %46, %50 : vector<16x128xf32>
    %52 = vector.extract_strided_slice %37 {offsets = [0, 0], sizes = [16, 32], strides = [1, 1]} : vector<16x128xf32> to vector<16x32xf32>
    %53 = arith.truncf %52 : vector<16x32xf32> to vector<16x32xbf16>
    %c0_25 = arith.constant 0 : index
    %c0_26 = arith.constant 0 : index
    %c0_27 = arith.constant 0 : index
    %54 = vector.load %arg19[%c0_25, %c0_26, %c0_27] : memref<4x16x32xbf16, #tpu.memory_space<vmem>>, vector<1x16x32xbf16>
    %55 = vector.shape_cast %54 : vector<1x16x32xbf16> to vector<16x32xbf16>
    %56 = vector.shape_cast %53 : vector<16x32xbf16> to vector<1x16x32xbf16>
    tpu.vector_store %arg19[%c0_25, %c0_26, %c0_27], %56 {strides = array<i32>} : memref<4x16x32xbf16, #tpu.memory_space<vmem>>, vector<1x16x32xbf16>,
    %57 = vector.extract_strided_slice %44 {offsets = [0, 0], sizes = [16, 32], strides = [1, 1]} : vector<16x128xf32> to vector<16x32xf32>
    %58 = arith.truncf %57 : vector<16x32xf32> to vector<16x32xbf16>
    %c0_28 = arith.constant 0 : index
    %c0_29 = arith.constant 0 : index
    %c0_30 = arith.constant 0 : index
    %59 = vector.load %arg20[%c0_28, %c0_29, %c0_30] : memref<4x16x32xbf16, #tpu.memory_space<vmem>>, vector<1x16x32xbf16>
    %60 = vector.shape_cast %59 : vector<1x16x32xbf16> to vector<16x32xbf16>
    %61 = vector.shape_cast %58 : vector<16x32xbf16> to vector<1x16x32xbf16>
    tpu.vector_store %arg20[%c0_28, %c0_29, %c0_30], %61 {strides = array<i32>} : memref<4x16x32xbf16, #tpu.memory_space<vmem>>, vector<1x16x32xbf16>,
    %62 = vector.extract_strided_slice %51 {offsets = [0, 0], sizes = [16, 32], strides = [1, 1]} : vector<16x128xf32> to vector<16x32xf32>
    %63 = arith.truncf %62 : vector<16x32xf32> to vector<16x32xbf16>
    %c0_31 = arith.constant 0 : index
    %c0_32 = arith.constant 0 : index
    %c0_33 = arith.constant 0 : index
    %64 = vector.load %arg21[%c0_31, %c0_32, %c0_33] : memref<4x16x32xbf16, #tpu.memory_space<vmem>>, vector<1x16x32xbf16>
    %65 = vector.shape_cast %64 : vector<1x16x32xbf16> to vector<16x32xbf16>
    %66 = vector.shape_cast %63 : vector<16x32xbf16> to vector<1x16x32xbf16>
    tpu.vector_store %arg21[%c0_31, %c0_32, %c0_33], %66 {strides = array<i32>} : memref<4x16x32xbf16, #tpu.memory_space<vmem>>, vector<1x16x32xbf16>,
    %67 = vector.extract_strided_slice %37 {offsets = [0, 32], sizes = [16, 32], strides = [1, 1]} : vector<16x128xf32> to vector<16x32xf32>
    %68 = arith.truncf %67 : vector<16x32xf32> to vector<16x32xbf16>
    %c1 = arith.constant 1 : index
    %c0_34 = arith.constant 0 : index
    %c0_35 = arith.constant 0 : index
    %69 = vector.load %arg19[%c1, %c0_34, %c0_35] : memref<4x16x32xbf16, #tpu.memory_space<vmem>>, vector<1x16x32xbf16>
    %70 = vector.shape_cast %69 : vector<1x16x32xbf16> to vector<16x32xbf16>
    %71 = vector.shape_cast %68 : vector<16x32xbf16> to vector<1x16x32xbf16>
    tpu.vector_store %arg19[%c1, %c0_34, %c0_35], %71 {strides = array<i32>} : memref<4x16x32xbf16, #tpu.memory_space<vmem>>, vector<1x16x32xbf16>,
    %72 = vector.extract_strided_slice %44 {offsets = [0, 32], sizes = [16, 32], strides = [1, 1]} : vector<16x128xf32> to vector<16x32xf32>
    %73 = arith.truncf %72 : vector<16x32xf32> to vector<16x32xbf16>
    %c1_36 = arith.constant 1 : index
    %c0_37 = arith.constant 0 : index
    %c0_38 = arith.constant 0 : index
    %74 = vector.load %arg20[%c1_36, %c0_37, %c0_38] : memref<4x16x32xbf16, #tpu.memory_space<vmem>>, vector<1x16x32xbf16>
    %75 = vector.shape_cast %74 : vector<1x16x32xbf16> to vector<16x32xbf16>
    %76 = vector.shape_cast %73 : vector<16x32xbf16> to vector<1x16x32xbf16>
    tpu.vector_store %arg20[%c1_36, %c0_37, %c0_38], %76 {strides = array<i32>} : memref<4x16x32xbf16, #tpu.memory_space<vmem>>, vector<1x16x32xbf16>,
    %77 = vector.extract_strided_slice %51 {offsets = [0, 32], sizes = [16, 32], strides = [1, 1]} : vector<16x128xf32> to vector<16x32xf32>
    %78 = arith.truncf %77 : vector<16x32xf32> to vector<16x32xbf16>
    %c1_39 = arith.constant 1 : index
    %c0_40 = arith.constant 0 : index
    %c0_41 = arith.constant 0 : index
    %79 = vector.load %arg21[%c1_39, %c0_40, %c0_41] : memref<4x16x32xbf16, #tpu.memory_space<vmem>>, vector<1x16x32xbf16>
    %80 = vector.shape_cast %79 : vector<1x16x32xbf16> to vector<16x32xbf16>
    %81 = vector.shape_cast %78 : vector<16x32xbf16> to vector<1x16x32xbf16>
    tpu.vector_store %arg21[%c1_39, %c0_40, %c0_41], %81 {strides = array<i32>} : memref<4x16x32xbf16, #tpu.memory_space<vmem>>, vector<1x16x32xbf16>,
    %82 = vector.extract_strided_slice %37 {offsets = [0, 64], sizes = [16, 32], strides = [1, 1]} : vector<16x128xf32> to vector<16x32xf32>
    %83 = arith.truncf %82 : vector<16x32xf32> to vector<16x32xbf16>
    %c2 = arith.constant 2 : index
    %c0_42 = arith.constant 0 : index
    %c0_43 = arith.constant 0 : index
    %84 = vector.load %arg19[%c2, %c0_42, %c0_43] : memref<4x16x32xbf16, #tpu.memory_space<vmem>>, vector<1x16x32xbf16>
    %85 = vector.shape_cast %84 : vector<1x16x32xbf16> to vector<16x32xbf16>
    %86 = vector.shape_cast %83 : vector<16x32xbf16> to vector<1x16x32xbf16>
    tpu.vector_store %arg19[%c2, %c0_42, %c0_43], %86 {strides = array<i32>} : memref<4x16x32xbf16, #tpu.memory_space<vmem>>, vector<1x16x32xbf16>,
    %87 = vector.extract_strided_slice %44 {offsets = [0, 64], sizes = [16, 32], strides = [1, 1]} : vector<16x128xf32> to vector<16x32xf32>
    %88 = arith.truncf %87 : vector<16x32xf32> to vector<16x32xbf16>
    %c2_44 = arith.constant 2 : index
    %c0_45 = arith.constant 0 : index
    %c0_46 = arith.constant 0 : index
    %89 = vector.load %arg20[%c2_44, %c0_45, %c0_46] : memref<4x16x32xbf16, #tpu.memory_space<vmem>>, vector<1x16x32xbf16>
    %90 = vector.shape_cast %89 : vector<1x16x32xbf16> to vector<16x32xbf16>
    %91 = vector.shape_cast %88 : vector<16x32xbf16> to vector<1x16x32xbf16>
    tpu.vector_store %arg20[%c2_44, %c0_45, %c0_46], %91 {strides = array<i32>} : memref<4x16x32xbf16, #tpu.memory_space<vmem>>, vector<1x16x32xbf16>,
    %92 = vector.extract_strided_slice %51 {offsets = [0, 64], sizes = [16, 32], strides = [1, 1]} : vector<16x128xf32> to vector<16x32xf32>
    %93 = arith.truncf %92 : vector<16x32xf32> to vector<16x32xbf16>
    %c2_47 = arith.constant 2 : index
    %c0_48 = arith.constant 0 : index
    %c0_49 = arith.constant 0 : index
    %94 = vector.load %arg21[%c2_47, %c0_48, %c0_49] : memref<4x16x32xbf16, #tpu.memory_space<vmem>>, vector<1x16x32xbf16>
    %95 = vector.shape_cast %94 : vector<1x16x32xbf16> to vector<16x32xbf16>
    %96 = vector.shape_cast %93 : vector<16x32xbf16> to vector<1x16x32xbf16>
    tpu.vector_store %arg21[%c2_47, %c0_48, %c0_49], %96 {strides = array<i32>} : memref<4x16x32xbf16, #tpu.memory_space<vmem>>, vector<1x16x32xbf16>,
    %97 = vector.extract_strided_slice %37 {offsets = [0, 96], sizes = [16, 32], strides = [1, 1]} : vector<16x128xf32> to vector<16x32xf32>
    %98 = arith.truncf %97 : vector<16x32xf32> to vector<16x32xbf16>
    %c3 = arith.constant 3 : index
    %c0_50 = arith.constant 0 : index
    %c0_51 = arith.constant 0 : index
    %99 = vector.load %arg19[%c3, %c0_50, %c0_51] : memref<4x16x32xbf16, #tpu.memory_space<vmem>>, vector<1x16x32xbf16>
    %100 = vector.shape_cast %99 : vector<1x16x32xbf16> to vector<16x32xbf16>
    %101 = vector.shape_cast %98 : vector<16x32xbf16> to vector<1x16x32xbf16>
    tpu.vector_store %arg19[%c3, %c0_50, %c0_51], %101 {strides = array<i32>} : memref<4x16x32xbf16, #tpu.memory_space<vmem>>, vector<1x16x32xbf16>,
    %102 = vector.extract_strided_slice %44 {offsets = [0, 96], sizes = [16, 32], strides = [1, 1]} : vector<16x128xf32> to vector<16x32xf32>
    %103 = arith.truncf %102 : vector<16x32xf32> to vector<16x32xbf16>
    %c3_52 = arith.constant 3 : index
    %c0_53 = arith.constant 0 : index
    %c0_54 = arith.constant 0 : index
    %104 = vector.load %arg20[%c3_52, %c0_53, %c0_54] : memref<4x16x32xbf16, #tpu.memory_space<vmem>>, vector<1x16x32xbf16>
    %105 = vector.shape_cast %104 : vector<1x16x32xbf16> to vector<16x32xbf16>
    %106 = vector.shape_cast %103 : vector<16x32xbf16> to vector<1x16x32xbf16>
    tpu.vector_store %arg20[%c3_52, %c0_53, %c0_54], %106 {strides = array<i32>} : memref<4x16x32xbf16, #tpu.memory_space<vmem>>, vector<1x16x32xbf16>,
    %107 = vector.extract_strided_slice %51 {offsets = [0, 96], sizes = [16, 32], strides = [1, 1]} : vector<16x128xf32> to vector<16x32xf32>
    %108 = arith.truncf %107 : vector<16x32xf32> to vector<16x32xbf16>
    %c3_55 = arith.constant 3 : index
    %c0_56 = arith.constant 0 : index
    %c0_57 = arith.constant 0 : index
    %109 = vector.load %arg21[%c3_55, %c0_56, %c0_57] : memref<4x16x32xbf16, #tpu.memory_space<vmem>>, vector<1x16x32xbf16>
    %110 = vector.shape_cast %109 : vector<1x16x32xbf16> to vector<16x32xbf16>
    %111 = vector.shape_cast %108 : vector<16x32xbf16> to vector<1x16x32xbf16>
    tpu.vector_store %arg21[%c3_55, %c0_56, %c0_57], %111 {strides = array<i32>} : memref<4x16x32xbf16, #tpu.memory_space<vmem>>, vector<1x16x32xbf16>,
    %cst_58 = arith.constant 0.000000e+00 : f32
    %112 = vector.broadcast %cst_58 : f32 to vector<16x128xf32>
    %c0_59 = arith.constant 0 : index
    %c0_60 = arith.constant 0 : index
    %113 = vector.load %arg22[%c0_59, %c0_60] : memref<16x128xf32, #tpu.memory_space<vmem>>, vector<16x128xf32>
    tpu.vector_store %arg22[%c0_59, %c0_60], %112 {strides = array<i32>} : memref<16x128xf32, #tpu.memory_space<vmem>>, vector<16x128xf32>,
    %c0_i32 = arith.constant 0 : i32
    %c4_i32 = arith.constant 4 : i32
    %114 = arith.addi %c0_i32, %c4_i32 : i32
    %c1_i32 = arith.constant 1 : i32
    scf.for %arg23 = %c0_i32 to %114 step %c1_i32  : i32 {
      %172 = arith.index_cast %arg23 : i32 to index
      %c0_89 = arith.constant 0 : index
      %c0_90 = arith.constant 0 : index
      %173 = vector.load %arg19[%172, %c0_89, %c0_90] : memref<4x16x32xbf16, #tpu.memory_space<vmem>>, vector<1x16x32xbf16>
      %174 = vector.shape_cast %173 : vector<1x16x32xbf16> to vector<16x32xbf16>
      %175 = arith.index_cast %arg23 : i32 to index
      %c0_91 = arith.constant 0 : index
      %c0_92 = arith.constant 0 : index
      %176 = vector.load %arg20[%175, %c0_91, %c0_92] : memref<4x16x32xbf16, #tpu.memory_space<vmem>>, vector<1x16x32xbf16>
      %177 = vector.shape_cast %176 : vector<1x16x32xbf16> to vector<16x32xbf16>
      %178 = arith.index_cast %arg23 : i32 to index
      %c0_93 = arith.constant 0 : index
      %c0_94 = arith.constant 0 : index
      %179 = vector.load %arg21[%178, %c0_93, %c0_94] : memref<4x16x32xbf16, #tpu.memory_space<vmem>>, vector<1x16x32xbf16>
      %180 = vector.shape_cast %179 : vector<1x16x32xbf16> to vector<16x32xbf16>
      %cst_95 = arith.constant dense<0.000000e+00> : vector<16x16xf32>
      %181 = tpu.matmul %174, %177, %cst_95 {dimension_numbers = #tpu.dot_dimension_numbers<[1], [1], [0], [0], [0, 0, 1, 0], [], []>} : vector<16x32xbf16>, vector<16x32xbf16>, vector<16x16xf32> -> vector<16x16xf32>
      %cst_96 = arith.constant 0.176776692 : f32
      %182 = vector.broadcast %cst_96 : f32 to vector<16x16xf32>
      %183 = arith.mulf %181, %182 : vector<16x16xf32>
      %cst_97 = arith.constant dense<0xFF800000> : vector<16xf32>
      %184 = vector.multi_reduction <maximumf>, %183, %cst_97 [1] : vector<16x16xf32> to vector<16xf32>
      %185 = vector.shape_cast %184 : vector<16xf32> to vector<16x1xf32>
      %186 = vector.broadcast %185 : vector<16x1xf32> to vector<16x16xf32>
      %187 = arith.subf %183, %186 : vector<16x16xf32>
      %188 = math.exp %187 : vector<16x16xf32>
      %cst_98 = arith.constant dense<0.000000e+00> : vector<16xf32>
      %189 = vector.multi_reduction <add>, %188, %cst_98 [1] : vector<16x16xf32> to vector<16xf32>
      %190 = vector.shape_cast %189 : vector<16xf32> to vector<16x1xf32>
      %191 = arith.truncf %188 : vector<16x16xf32> to vector<16x16xbf16>
      %cst_99 = arith.constant dense<0.000000e+00> : vector<16x32xf32>
      %192 = tpu.matmul %191, %180, %cst_99 {dimension_numbers = #tpu.dot_dimension_numbers<[1], [0], [0], [1], [0, 0, 1, 1], [], []>} : vector<16x16xbf16>, vector<16x32xbf16>, vector<16x32xf32> -> vector<16x32xf32>
      %193 = tpu.reciprocal %190 {approx = true} : vector<16x1xf32> -> vector<16x1xf32>
      %194 = vector.broadcast %193 : vector<16x1xf32> to vector<16x32xf32>
      %195 = arith.mulf %192, %194 : vector<16x32xf32>
      %c0_100 = arith.constant 0 : index
      %c0_101 = arith.constant 0 : index
      %196 = vector.load %arg22[%c0_100, %c0_101] : memref<16x128xf32, #tpu.memory_space<vmem>>, vector<16x128xf32>
      %197 = arith.truncf %195 : vector<16x32xf32> to vector<16x32xbf16>
      %198 = arith.index_cast %arg23 : i32 to index
      %c0_102 = arith.constant 0 : index
      %c0_103 = arith.constant 0 : index
      %199 = vector.load %arg10[%198, %c0_102, %c0_103] : memref<4x32x128xbf16, #tpu.memory_space<vmem>>, vector<1x32x128xbf16>
      %200 = vector.shape_cast %199 : vector<1x32x128xbf16> to vector<32x128xbf16>
      %cst_104 = arith.constant dense<0.000000e+00> : vector<16x128xf32>
      %201 = tpu.matmul %197, %200, %cst_104 {dimension_numbers = #tpu.dot_dimension_numbers<[1], [0], [0], [1], [0, 0, 1, 1], [], []>} : vector<16x32xbf16>, vector<32x128xbf16>, vector<16x128xf32> -> vector<16x128xf32>
      %202 = arith.addf %196, %201 : vector<16x128xf32>
      %c0_105 = arith.constant 0 : index
      %c0_106 = arith.constant 0 : index
      %203 = vector.load %arg22[%c0_105, %c0_106] : memref<16x128xf32, #tpu.memory_space<vmem>>, vector<16x128xf32>
      tpu.vector_store %arg22[%c0_105, %c0_106], %202 {strides = array<i32>} : memref<16x128xf32, #tpu.memory_space<vmem>>, vector<16x128xf32>,
    }
    %c4_i32_61 = arith.constant 4 : i32
    %c0_62 = arith.constant 0 : index
    %c0_63 = arith.constant 0 : index
    %115 = vector.load %arg22[%c0_62, %c0_63] : memref<16x128xf32, #tpu.memory_space<vmem>>, vector<16x128xf32>
    %116 = arith.addf %1, %115 : vector<16x128xf32>
    %c0_64 = arith.constant 0 : index
    %c0_65 = arith.constant 0 : index
    %117 = vector.load %arg11[%c0_64, %c0_65] : memref<1x128xf32, #tpu.memory_space<vmem>>, vector<1x128xf32>
    %118 = vector.shape_cast %117 : vector<1x128xf32> to vector<128xf32>
    %119 = vector.shape_cast %118 : vector<128xf32> to vector<1x128xf32>
    %120 = vector.broadcast %119 : vector<1x128xf32> to vector<16x128xf32>
    %121 = arith.addf %116, %120 : vector<16x128xf32>
    %c0_66 = arith.constant 0 : index
    %c0_67 = arith.constant 0 : index
    %122 = vector.load %arg12[%c0_66, %c0_67] : memref<1x128xf32, #tpu.memory_space<vmem>>, vector<1x128xf32>
    %123 = vector.shape_cast %122 : vector<1x128xf32> to vector<128xf32>
    %c0_68 = arith.constant 0 : index
    %c0_69 = arith.constant 0 : index
    %124 = vector.load %arg13[%c0_68, %c0_69] : memref<1x128xf32, #tpu.memory_space<vmem>>, vector<1x128xf32>
    %125 = vector.shape_cast %124 : vector<1x128xf32> to vector<128xf32>
    %cst_70 = arith.constant dense<0.000000e+00> : vector<16xf32>
    %126 = vector.multi_reduction <add>, %121, %cst_70 [1] : vector<16x128xf32> to vector<16xf32>
    %127 = vector.shape_cast %126 : vector<16xf32> to vector<16x1xf32>
    %cst_71 = arith.constant 1.280000e+02 : f32
    %128 = vector.broadcast %cst_71 : f32 to vector<16x1xf32>
    %129 = arith.divf %127, %128 : vector<16x1xf32>
    %130 = arith.mulf %121, %121 : vector<16x128xf32>
    %cst_72 = arith.constant dense<0.000000e+00> : vector<16xf32>
    %131 = vector.multi_reduction <add>, %130, %cst_72 [1] : vector<16x128xf32> to vector<16xf32>
    %132 = vector.shape_cast %131 : vector<16xf32> to vector<16x1xf32>
    %cst_73 = arith.constant 1.280000e+02 : f32
    %133 = vector.broadcast %cst_73 : f32 to vector<16x1xf32>
    %134 = arith.divf %132, %133 : vector<16x1xf32>
    %135 = arith.mulf %129, %129 : vector<16x1xf32>
    %136 = arith.subf %134, %135 : vector<16x1xf32>
    %137 = vector.broadcast %129 : vector<16x1xf32> to vector<16x128xf32>
    %138 = arith.subf %121, %137 : vector<16x128xf32>
    %cst_74 = arith.constant 9.99999974E-6 : f32
    %139 = vector.broadcast %cst_74 : f32 to vector<16x1xf32>
    %140 = arith.addf %136, %139 : vector<16x1xf32>
    %141 = math.rsqrt %140 : vector<16x1xf32>
    %142 = vector.broadcast %141 : vector<16x1xf32> to vector<16x128xf32>
    %143 = arith.mulf %138, %142 : vector<16x128xf32>
    %144 = vector.shape_cast %123 : vector<128xf32> to vector<1x128xf32>
    %145 = vector.broadcast %144 : vector<1x128xf32> to vector<16x128xf32>
    %146 = arith.mulf %143, %145 : vector<16x128xf32>
    %147 = vector.shape_cast %125 : vector<128xf32> to vector<1x128xf32>
    %148 = vector.broadcast %147 : vector<1x128xf32> to vector<16x128xf32>
    %149 = arith.addf %146, %148 : vector<16x128xf32>
    %150 = arith.truncf %149 : vector<16x128xf32> to vector<16x128xbf16>
    %c0_75 = arith.constant 0 : index
    %c0_76 = arith.constant 0 : index
    %151 = vector.load %arg14[%c0_75, %c0_76] : memref<128x256xbf16, #tpu.memory_space<vmem>>, vector<128x256xbf16>
    %cst_77 = arith.constant dense<0.000000e+00> : vector<16x256xf32>
    %152 = tpu.matmul %150, %151, %cst_77 {dimension_numbers = #tpu.dot_dimension_numbers<[1], [0], [0], [1], [0, 0, 1, 1], [], []>} : vector<16x128xbf16>, vector<128x256xbf16>, vector<16x256xf32> -> vector<16x256xf32>
    %c0_78 = arith.constant 0 : index
    %c0_79 = arith.constant 0 : index
    %153 = vector.load %arg15[%c0_78, %c0_79] : memref<1x256xf32, #tpu.memory_space<vmem>>, vector<1x256xf32>
    %154 = vector.shape_cast %153 : vector<1x256xf32> to vector<256xf32>
    %155 = vector.shape_cast %154 : vector<256xf32> to vector<1x256xf32>
    %156 = vector.broadcast %155 : vector<1x256xf32> to vector<16x256xf32>
    %157 = arith.addf %152, %156 : vector<16x256xf32>
    %cst_80 = arith.constant 0.000000e+00 : f32
    %158 = vector.broadcast %cst_80 : f32 to vector<16x256xf32>
    %159 = arith.maximumf %157, %158 : vector<16x256xf32>
    %160 = arith.truncf %159 : vector<16x256xf32> to vector<16x256xbf16>
    %c0_81 = arith.constant 0 : index
    %c0_82 = arith.constant 0 : index
    %161 = vector.load %arg16[%c0_81, %c0_82] : memref<256x128xbf16, #tpu.memory_space<vmem>>, vector<256x128xbf16>
    %cst_83 = arith.constant dense<0.000000e+00> : vector<16x128xf32>
    %162 = tpu.matmul %160, %161, %cst_83 {dimension_numbers = #tpu.dot_dimension_numbers<[1], [0], [0], [1], [0, 0, 1, 1], [], []>} : vector<16x256xbf16>, vector<256x128xbf16>, vector<16x128xf32> -> vector<16x128xf32>
    %c0_84 = arith.constant 0 : index
    %c0_85 = arith.constant 0 : index
    %163 = vector.load %arg17[%c0_84, %c0_85] : memref<1x128xf32, #tpu.memory_space<vmem>>, vector<1x128xf32>
    %164 = vector.shape_cast %163 : vector<1x128xf32> to vector<128xf32>
    %165 = vector.shape_cast %164 : vector<128xf32> to vector<1x128xf32>
    %166 = vector.broadcast %165 : vector<1x128xf32> to vector<16x128xf32>
    %167 = arith.addf %162, %166 : vector<16x128xf32>
    %168 = arith.addf %121, %167 : vector<16x128xf32>
    %c0_86 = arith.constant 0 : index
    %c0_87 = arith.constant 0 : index
    %c0_88 = arith.constant 0 : index
    %169 = vector.load %arg18[%c0_86, %c0_87, %c0_88] : memref<1x16x128xf32, #tpu.memory_space<vmem>>, vector<1x16x128xf32>
    %170 = vector.shape_cast %169 : vector<1x16x128xf32> to vector<16x128xf32>
    %171 = vector.shape_cast %168 : vector<16x128xf32> to vector<1x16x128xf32>
    tpu.vector_store %arg18[%c0_86, %c0_87, %c0_88], %171 {strides = array<i32>} : memref<1x16x128xf32, #tpu.memory_space<vmem>>, vector<1x16x128xf32>,
    return
  }
  func.func @transform_0(%arg0: i32) -> (i32, i32, i32) {
    %c0_i32 = arith.constant 0 : i32
    %c0_i32_0 = arith.constant 0 : i32
    %c0_i32_1 = arith.constant 0 : i32
    return %arg0, %c0_i32, %c0_i32_0 : i32, i32, i32
  }
  func.func @transform_1(%arg0: i32) -> (i32, i32) {
    %c0_i32 = arith.constant 0 : i32
    %c0_i32_0 = arith.constant 0 : i32
    %c0_i32_1 = arith.constant 0 : i32
    return %c0_i32, %c0_i32_0 : i32, i32
  }
  func.func @transform_2(%arg0: i32) -> (i32, i32) {
    %c0_i32 = arith.constant 0 : i32
    %c0_i32_0 = arith.constant 0 : i32
    %c0_i32_1 = arith.constant 0 : i32
    return %c0_i32, %c0_i32_0 : i32, i32
  }
  func.func @transform_3(%arg0: i32) -> (i32, i32) {
    %c0_i32 = arith.constant 0 : i32
    %c0_i32_0 = arith.constant 0 : i32
    %c0_i32_1 = arith.constant 0 : i32
    return %c0_i32, %c0_i32_0 : i32, i32
  }
  func.func @transform_4(%arg0: i32) -> (i32, i32) {
    %c0_i32 = arith.constant 0 : i32
    %c0_i32_0 = arith.constant 0 : i32
    %c0_i32_1 = arith.constant 0 : i32
    return %c0_i32, %c0_i32_0 : i32, i32
  }
  func.func @transform_5(%arg0: i32) -> (i32, i32) {
    %c0_i32 = arith.constant 0 : i32
    %c0_i32_0 = arith.constant 0 : i32
    %c0_i32_1 = arith.constant 0 : i32
    return %c0_i32, %c0_i32_0 : i32, i32
  }
  func.func @transform_6(%arg0: i32) -> (i32, i32) {
    %c0_i32 = arith.constant 0 : i32
    %c0_i32_0 = arith.constant 0 : i32
    %c0_i32_1 = arith.constant 0 : i32
    return %c0_i32, %c0_i32_0 : i32, i32
  }
  func.func @transform_7(%arg0: i32) -> (i32, i32) {
    %c0_i32 = arith.constant 0 : i32
    %c0_i32_0 = arith.constant 0 : i32
    %c0_i32_1 = arith.constant 0 : i32
    return %c0_i32, %c0_i32_0 : i32, i32
  }
  func.func @transform_8(%arg0: i32) -> (i32, i32) {
    %c0_i32 = arith.constant 0 : i32
    %c0_i32_0 = arith.constant 0 : i32
    %c0_i32_1 = arith.constant 0 : i32
    return %c0_i32, %c0_i32_0 : i32, i32
  }
  func.func @transform_9(%arg0: i32) -> (i32, i32, i32) {
    %c0_i32 = arith.constant 0 : i32
    %c0_i32_0 = arith.constant 0 : i32
    %c0_i32_1 = arith.constant 0 : i32
    %c0_i32_2 = arith.constant 0 : i32
    return %c0_i32, %c0_i32_0, %c0_i32_1 : i32, i32, i32
  }
  func.func @transform_10(%arg0: i32) -> (i32, i32) {
    %c0_i32 = arith.constant 0 : i32
    %c0_i32_0 = arith.constant 0 : i32
    %c0_i32_1 = arith.constant 0 : i32
    return %c0_i32, %c0_i32_0 : i32, i32
  }
  func.func @transform_11(%arg0: i32) -> (i32, i32) {
    %c0_i32 = arith.constant 0 : i32
    %c0_i32_0 = arith.constant 0 : i32
    %c0_i32_1 = arith.constant 0 : i32
    return %c0_i32, %c0_i32_0 : i32, i32
  }
  func.func @transform_12(%arg0: i32) -> (i32, i32) {
    %c0_i32 = arith.constant 0 : i32
    %c0_i32_0 = arith.constant 0 : i32
    %c0_i32_1 = arith.constant 0 : i32
    return %c0_i32, %c0_i32_0 : i32, i32
  }
  func.func @transform_13(%arg0: i32) -> (i32, i32) {
    %c0_i32 = arith.constant 0 : i32
    %c0_i32_0 = arith.constant 0 : i32
    %c0_i32_1 = arith.constant 0 : i32
    return %c0_i32, %c0_i32_0 : i32, i32
  }
  func.func @transform_14(%arg0: i32) -> (i32, i32) {
    %c0_i32 = arith.constant 0 : i32
    %c0_i32_0 = arith.constant 0 : i32
    %c0_i32_1 = arith.constant 0 : i32
    return %c0_i32, %c0_i32_0 : i32, i32
  }
  func.func @transform_15(%arg0: i32) -> (i32, i32) {
    %c0_i32 = arith.constant 0 : i32
    %c0_i32_0 = arith.constant 0 : i32
    %c0_i32_1 = arith.constant 0 : i32
    return %c0_i32, %c0_i32_0 : i32, i32
  }
  func.func @transform_16(%arg0: i32) -> (i32, i32) {
    %c0_i32 = arith.constant 0 : i32
    %c0_i32_0 = arith.constant 0 : i32
    %c0_i32_1 = arith.constant 0 : i32
    return %c0_i32, %c0_i32_0 : i32, i32
  }
  func.func @transform_17(%arg0: i32) -> (i32, i32, i32) {
    %c0_i32 = arith.constant 0 : i32
    %c0_i32_0 = arith.constant 0 : i32
    %c0_i32_1 = arith.constant 0 : i32
    return %arg0, %c0_i32, %c0_i32_0 : i32, i32, i32
  }
}

</mosaic_0001>

<bundles_post_ra>
// kernel: tpu_custom_call.1
= control target key start
LH: loop header
LB: loop body
LE: loop exit
PB: predicated region body
PF: predicated region fallthrough
CT: control target
= control target key end

     0   :  { %s3181_s0 = inlined_call_operand.hbm [shape: f32[2,16,128], index: 0, kind: input, shape index: {}]   ;;  %s3182_s1 = inlined_call_operand.vmem [shape: f32[1,128], index: 1, kind: input, shape index: {}]   ;;  %s3183_s2 = inlined_call_operand.vmem [shape: f32[1,128], index: 2, kind: input, shape index: {}]   ;;  %s3184_s3 = inlined_call_operand.hbm [shape: bf16[128,128], index: 3, kind: input, shape index: {}]   ;;  %s3185_s4 = inlined_call_operand.hbm [shape: bf16[128,128], index: 4, kind: input, shape index: {}]   ;;  %s3186_s5 = inlined_call_operand.hbm [shape: bf16[128,128], index: 5, kind: input, shape index: {}]   ;;  %s3187_s6 = inlined_call_operand.vmem [shape: f32[1,128], index: 6, kind: input, shape index: {}]   ;;  %s3188_s7 = inlined_call_operand.vmem [shape: f32[1,128], index: 7, kind: input, shape index: {}]   ;;  %s3189_s8 = inlined_call_operand.vmem [shape: f32[1,128], index: 8, kind: input, shape index: {}]   ;;  %s3190_s9 = inlined_call_operand.hbm [shape: bf16[4,32,128], index: 9, kind: input, shape index: {}]   ;;  %s3191_s10 = inlined_call_operand.vmem [shape: f32[1,128], index: 10, kind: input, shape index: {}]   ;;  %s3192_s11 = inlined_call_operand.vmem [shape: f32[1,128], index: 11, kind: input, shape index: {}]   ;;  %s3193_s12 = inlined_call_operand.vmem [shape: f32[1,128], index: 12, kind: input, shape index: {}]   ;;  %s3194_s13 = inlined_call_operand.hbm [shape: bf16[128,256], index: 13, kind: input, shape index: {}]   ;;  %s3195_s14 = inlined_call_operand.vmem [shape: f32[1,256], index: 14, kind: input, shape index: {}]   ;;  %s3196_s15 = inlined_call_operand.hbm [shape: bf16[256,128], index: 15, kind: input, shape index: {}]   ;;  %s3197_s16 = inlined_call_operand.vmem [shape: f32[1,128], index: 16, kind: input, shape index: {}]   ;;  %s3198_s17 = inlined_call_operand.hbm [shape: f32[2,16,128], index: 17, kind: output, shape index: {}]  }
   0x1   :  { %3209 = sst [smem:[#allocation24_spill]] %s3181_s0 }
   0x2   :  { %3210 = sst [smem:[#allocation25_spill]] %s3182_s1 }
   0x3   :  { %3211 = sst [smem:[#allocation26_spill]] %s3184_s3 }
   0x4   :  { %3212 = sst [smem:[#allocation27_spill]] %s3186_s5 }
   0x5   :  { %3213 = sst [smem:[#allocation28_spill]] %s3189_s8 }
   0x6   :  { %3214 = sst [smem:[#allocation29_spill]] %s3191_s10 }
   0x7   :  { %3215 = sst [smem:[#allocation30_spill]] %s3192_s11 }
   0x8   :  { %3216 = sst [smem:[#allocation31_spill]] %s3193_s12 }
   0x9   :  { %3217 = sst [smem:[#allocation32_spill]] %s3195_s14 }
   0xa   :  { %3218 = sst [smem:[#allocation33_spill]] %s3197_s16 }
   0xb   :  { %3219 = sst [smem:[#allocation34_spill]] %s3198_s17 }
   0xc   :  { %22 = vsyncpa [#allocation7], 0 }
   0xd   :  { %24 = vsyncpa [#allocation7 + $0x1], 0 }
   0xe   :  { %25 = vsyncpa [#allocation10], 0 }
   0xf   :  { %26 = vsyncpa [#allocation13], 0 }
  0x10   :  { %27 = vsyncpa [#allocation16], 0 }
  0x11   :  { %28 = vsyncpa [#allocation8], 0 }
  0x12   :  { %30 = vsyncpa [#allocation8 + $0x1], 0  ;;  %s2699_s24 = smov 0   ;;  %s2701_s25 = smov 0  }
  0x13   :  { %s2703_s26 = smov 0   ;;  %s2705_s27 = smov 0  }
  0x14 LB: > { %s2587_s28 = smov [#allocation9]   ;;  %s2720_s0 = sadd.s32 4294967295, %s2581_s27   ;;  %s2581_s27 = sphi %s2705_s27, %s3256_s27   ;;  %s2577_s26 = sphi %s2703_s26, %s3255_s26   ;;  %s2573_s25 = sphi %s2701_s25, %s3254_s25   ;;  %s2569_s24 = sphi %s2699_s24, %s3253_s24  }
  0x15   : > { %s447_s29 = sshll.u32 %s2587_s28, 4  ;;  %p1851_p0 = scmp.ge.s32.totalorder %s2581_s27, 1  ;;  %s2725_s29 = int_to_ptr.vmem [resolvable:$true] %s447_s29 }
  0x16   : > { %p3205_p1 = scmp.eq.s32.totalorder %s2720_s0, 0  ;;  %p429_p2 = scmp.lt.s32.totalorder %s2581_s27, 3 }
  0x17   : > { %s2588_s18 = smov [#allocation12]   ;;  %s2589_s20 = smov [#allocation15]  }
  0x18   : > { %p2727_p3 = pnand %p1851_p0, %p429_p2  ;;  %s473_s19 = sshll.u32 %s2588_s18, 4  ;;  %s2740_s19 = int_to_ptr.vmem [resolvable:$true] %s473_s19 }
  0x19   : > { %s517_s21 = sshll.u32 %s2589_s20, 4  ;;  %s3222_s3 = sld [smem:[#allocation26_spill]]  ;;  %s2742_s21 = int_to_ptr.vmem [resolvable:$true] %s517_s21 }
  0x1a   : > { %s3220_s30 = scalar_select %p2727_p3, 1, 0 }
  0x1b   : > { %p2118_p5 = pneg %p2727_p3 }
  0x1d   : > { %p2736_p6 = pnand %p2118_p5, %p3205_p1 }
  0x1f   : > { %s2301_s28 = scalar_lea.hbm %s3222_s3, 1024  ;;  %p2752_p8 = pneg %p2736_p6 }
  0x20   : > { %p2302_p7 = scmp.ne.s32.totalorder %s3222_s3, %s2301_s28  ;;  %p2308_p11 = scmp.lt.u32.totalorder %s2301_s28, %s3222_s3 }
  0x22   : > { %p2304_p9 = pnand %p2752_p8, %p2302_p7 }
  0x24   : > { %p2305_p10 = pneg %p2304_p9 }
  0x26   : > { %p2310_p12 = pnand %p2308_p11, %p2305_p10 }
  0x28   : > { %2313 = shalt.err (!%p2310_p12)
}
  0x29   : > { %s2314_s16 = scalar_lea.vmem %s2725_s29, 1024  ;;  %p2322_p5 = scmp.lt.s32.totalorder %s2725_s29, %s2725_s29 }
  0x2a   : > { %p2315_p13 = scmp.ne.s32.totalorder %s2725_s29, %s2314_s16  ;;  %p2323_p4 = scmp.lt.s32.totalorder %s2314_s16, %s2314_s16 }
  0x2c   : > { %p2317_p0 = pnand %p2315_p13, %p2752_p8  ;;  %p2324_p7 = por %p2323_p4, %p2322_p5 }
  0x2e   : > { %p2318_p2 = pneg %p2317_p0 }
  0x30   : > { %p2325_p9 = pnand %p2324_p7, %p2318_p2 }
  0x32   : > { %2328 = shalt.err (!%p2325_p9)
}
  0x33   : > { %s3201_s17 = smov 64   ;;  %s3203_s14 = smov 4  }
  0x34   : > { %2121 = dma.hbm_to_vmem [thread:$0]  (!%p2736_p6), %s3222_s3, 1024, %s2725_s29, [#allocation10], %s3201_s17, %s3201_s17, %s3203_s14  }
  0x35   : > { %s3224_s5 = sld [smem:[#allocation27_spill]] }
  0x3b   : > { %s2329_s16 = scalar_lea.hbm %s3224_s5, 1024 }
  0x3c   : > { %p2330_p4 = scmp.ne.s32.totalorder %s3224_s5, %s2329_s16  ;;  %p2336_p12 = scmp.lt.u32.totalorder %s2329_s16, %s3224_s5 }
  0x3e   : > { %p2332_p10 = pnand %p2330_p4, %p2752_p8 }
  0x40   : > { %p2333_p11 = pneg %p2332_p10 }
  0x42   : > { %p2338_p13 = pnand %p2336_p12, %p2333_p11 }
  0x44   : > { %2341 = shalt.err (!%p2338_p13)
}
  0x45   : > { %s2342_s29 = scalar_lea.vmem %s2740_s19, 1024  ;;  %p2350_p7 = scmp.lt.s32.totalorder %s2740_s19, %s2740_s19 }
  0x46   : > { %p2343_p0 = scmp.ne.s32.totalorder %s2740_s19, %s2342_s29  ;;  %p2351_p9 = scmp.lt.s32.totalorder %s2342_s29, %s2342_s29 }
  0x48   : > { %p2345_p2 = pnand %p2343_p0, %p2752_p8  ;;  %p2352_p4 = por %p2351_p9, %p2350_p7 }
  0x4a   : > { %p2346_p5 = pneg %p2345_p2 }
  0x4c   : > { %p2353_p10 = pnand %p2352_p4, %p2346_p5 }
  0x4e   : > { %2356 = shalt.err (!%p2353_p10)
}
  0x4f   : > { %2127 = dma.hbm_to_vmem [thread:$0]  (!%p2736_p6), %s3224_s5, 1024, %s2740_s19, [#allocation13], %s3201_s17, %s3201_s17, %s3203_s14  }
  0x50   : > { %s2357_s22 = scalar_lea.hbm %s3194_s13, 2048 }
  0x51   : > { %p2358_p11 = scmp.ne.s32.totalorder %s3194_s13, %s2357_s22  ;;  %p2364_p0 = scmp.lt.u32.totalorder %s2357_s22, %s3194_s13 }
  0x53   : > { %p2360_p12 = pnand %p2358_p11, %p2752_p8 }
  0x55   : > { %p2361_p13 = pneg %p2360_p12 }
  0x57   : > { %p2366_p2 = pnand %p2364_p0, %p2361_p13 }
  0x59   : > { %2369 = shalt.err (!%p2366_p2)
}
  0x5a   : > { %s2370_s19 = scalar_lea.vmem %s2742_s21, 2048  ;;  %p2378_p4 = scmp.lt.s32.totalorder %s2742_s21, %s2742_s21 }
  0x5b   : > { %p2371_p5 = scmp.ne.s32.totalorder %s2742_s21, %s2370_s19  ;;  %p2379_p10 = scmp.lt.s32.totalorder %s2370_s19, %s2370_s19 }
  0x5d   : > { %p2373_p7 = pnand %p2371_p5, %p2752_p8  ;;  %p2380_p11 = por %p2379_p10, %p2378_p4 }
  0x5f   : > { %p2374_p9 = pneg %p2373_p7 }
  0x61   : > { %p2381_p12 = pnand %p2380_p11, %p2374_p9 }
  0x63   : > { %2384 = shalt.err (!%p2381_p12)
}
  0x64   : > { %s3207_s29 = smov 128   ;;  %s2593_s8 = smov 8  }
  0x65   : > { %2133 = dma.hbm_to_vmem [thread:$0]  (!%p2736_p6), %s3194_s13, 2048, %s2742_s21, [#allocation16], %s3207_s29, %s3207_s29, %s2593_s8  }
  0x66   : > { %s2594_s12 = smov [#allocation11]   ;;  %s2595_s23 = smov [#allocation14]  }
  0x67   : > { %s460_s22 = sshll.u32 %s2594_s12, 4  ;;  %s495_s28 = sshll.u32 %s2595_s23, 4  ;;  %s461_s22 = int_to_ptr.vmem [resolvable:$true] %s460_s22  ;;  %s496_s28 = int_to_ptr.vmem [resolvable:$true] %s495_s28 }
  0x68   : > { %s2385_s19 = scalar_lea.hbm %s3185_s4, 1024 }
  0x69   : > { %p2386_p13 = scmp.ne.s32.totalorder %s3185_s4, %s2385_s19  ;;  %p2392_p5 = scmp.lt.u32.totalorder %s2385_s19, %s3185_s4 }
  0x6b   : > { %p2388_p0 = pnand %p2386_p13, %p2752_p8 }
  0x6d   : > { %p2389_p2 = pneg %p2388_p0 }
  0x6f   : > { %p2394_p7 = pnand %p2392_p5, %p2389_p2 }
  0x71   : > { %2397 = shalt.err (!%p2394_p7)
}
  0x72   : > { %s2398_s21 = scalar_lea.vmem %s461_s22, 1024  ;;  %p2406_p11 = scmp.lt.s32.totalorder %s461_s22, %s461_s22 }
  0x73   : > { %p2399_p9 = scmp.ne.s32.totalorder %s461_s22, %s2398_s21  ;;  %p2407_p12 = scmp.lt.s32.totalorder %s2398_s21, %s2398_s21 }
  0x75   : > { %p2401_p4 = pnand %p2399_p9, %p2752_p8  ;;  %p2408_p1 = por %p2407_p12, %p2406_p11 }
  0x77   : > { %p2402_p10 = pneg %p2401_p4 }
  0x79   : > { %p2409_p3 = pnand %p2408_p1, %p2402_p10 }
  0x7b   : > { %2412 = shalt.err (!%p2409_p3)
}
  0x7c   : > { %s3225_s17 = smov 4   ;;  %s3226_s14 = smov 64  }
  0x7d   : > { %2124 = dma.hbm_to_vmem [thread:$0]  (!%p2736_p6), %s3185_s4, 1024, %s461_s22, [#allocation10], %s3226_s14, %s3226_s14, %s3225_s17  }
  0x7e   : > { %s2413_s12 = scalar_lea.hbm %s3190_s9, 1024 }
  0x7f   : > { %p2414_p1 = scmp.ne.s32.totalorder %s3190_s9, %s2413_s12  ;;  %p2420_p0 = scmp.lt.u32.totalorder %s2413_s12, %s3190_s9 }
  0x81   : > { %p2416_p3 = pnand %p2414_p1, %p2752_p8 }
  0x83   : > { %p2417_p13 = pneg %p2416_p3 }
  0x85   : > { %p2422_p2 = pnand %p2420_p0, %p2417_p13 }
  0x87   : > { %2425 = shalt.err (!%p2422_p2)
}
  0x88   : > { %s2426_s21 = scalar_lea.vmem %s496_s28, 1024  ;;  %p2434_p4 = scmp.lt.s32.totalorder %s496_s28, %s496_s28 }
  0x89   : > { %p2427_p5 = scmp.ne.s32.totalorder %s496_s28, %s2426_s21  ;;  %p2435_p10 = scmp.lt.s32.totalorder %s2426_s21, %s2426_s21 }
  0x8b   : > { %p2429_p7 = pnand %p2427_p5, %p2752_p8  ;;  %p2436_p11 = por %p2435_p10, %p2434_p4 }
  0x8d   : > { %p2430_p9 = pneg %p2429_p7 }
  0x8f   : > { %p2437_p12 = pnand %p2436_p11, %p2430_p9 }
  0x91   : > { %2440 = shalt.err (!%p2437_p12)
}
  0x92   : > { %2130 = dma.hbm_to_vmem [thread:$0]  (!%p2736_p6), %s3190_s9, 1024, %s496_s28, [#allocation13], %s3226_s14, %s3226_s14, %s3225_s17  }
  0x93   : > { %s2596_s5 = smov [#allocation17]   ;;  %s2441_s23 = scalar_lea.hbm %s3196_s15, 2048 }
  0x94   : > { %s533_s10 = sshll.u32 %s2596_s5, 4  ;;  %p2442_p1 = scmp.ne.s32.totalorder %s3196_s15, %s2441_s23  ;;  %s534_s10 = int_to_ptr.vmem [resolvable:$true] %s533_s10 }
  0x95   : > { %p2448_p0 = scmp.lt.u32.totalorder %s2441_s23, %s3196_s15 }
  0x96   : > { %p2444_p3 = pnand %p2442_p1, %p2752_p8 }
  0x98   : > { %p2445_p13 = pneg %p2444_p3 }
  0x9a   : > { %p2450_p2 = pnand %p2448_p0, %p2445_p13 }
  0x9c   : > { %2453 = shalt.err (!%p2450_p2)
}
  0x9d   : > { %s2454_s28 = scalar_lea.vmem %s534_s10, 2048  ;;  %p2462_p4 = scmp.lt.s32.totalorder %s534_s10, %s534_s10 }
  0x9e   : > { %p2455_p5 = scmp.ne.s32.totalorder %s534_s10, %s2454_s28  ;;  %p2463_p10 = scmp.lt.s32.totalorder %s2454_s28, %s2454_s28 }
  0xa0   : > { %p2457_p7 = pnand %p2455_p5, %p2752_p8  ;;  %p2464_p11 = por %p2463_p10, %p2462_p4 }
  0xa2   : > { %p2458_p9 = pneg %p2457_p7 }
  0xa4   : > { %p2465_p12 = pnand %p2464_p11, %p2458_p9 }
  0xa6   : > { %2468 = shalt.err (!%p2465_p12)
}
  0xa7   : > { %2136 = dma.hbm_to_vmem [thread:$0]  (!%p2736_p6), %s3196_s15, 2048, %s534_s10, [#allocation16], %s3226_s14, %s3226_s14, %s3225_s17  }
  0xa8   : > { %s1850_s1 = sadd.s32 4294967294, %s2581_s27   ;;  %s2893_s18 = sadd.s32 1, %s2581_s27  }
  0xa9   : > { %s40_s5 = ssub.s32 %s2581_s27, %s2893_s18  ;;  %s43_s11 = sadd.s32 1, %s2577_s26 }
  0xaa   : > { %p41_p8 = scmp.eq.s32.totalorder %s40_s5, 0  ;;  %p50_p1 = scmp.ne.s32.totalorder %s2577_s26, %s2573_s25 }
  0xab   : > { %p51_p3 = scmp.eq.s32.totalorder %s2581_s27, 0  ;;  %p56_p13 = scmp.ne.s32.totalorder %s2573_s25, %s2569_s24 }
  0xac   : > { %s2904_s12 = scalar_select %p41_p8, %s2577_s26, %s43_s11  }
  0xad   : > { %p2906_p0 = por %p51_p3, %p50_p1  ;;  %p3228_p2 = scmp.eq.s32.totalorder %s2720_s0, 0 }
  0xae   : > { %p416_p5 = scmp.eq.s32.totalorder %s2720_s0, 1  ;;  %p422_p7 = scmp.eq.s32.totalorder %s1850_s1, 1 }
  0xaf   : > { %p2912_p6 = por %p3228_p2, %p56_p13  ;;  %p2151_p9 = scmp.lt.s32.totalorder %s2581_s27, 2 }
  0xb0   : > { %s550_s14 = sand.u32 1, %s2577_s26   ;;  %p2919_p4 = por %p416_p5, %p50_p1 }
  0xb1   : > { %p2923_p10 = por %p422_p7, %p56_p13  ;;  %s1859_s16 = sshll.u32 %s550_s14, 4 }
  0xb2   : > { %s3230_s10 = scalar_select %p2919_p4, 1, 0 }
  0xb3   : > { %s3231_s20 = scalar_select %p2923_p10, 1, 0 }
  0xb4   : > { %s1951_s19 = sshll.u32 %s2581_s27, 8  ;;  %s3232_s22 = sld [smem:[#allocation24_spill]] }
  0xb5   : > { %s554_s1 = scalar_lea.vmem [#allocation6], %s1859_s16  ;;  %p2937_p11 = pnand %p2151_p9, %p2906_p0 }
  0xb6   : > { %s561_s5 = sshll.u32 %s554_s1, 4  ;;  %s2941_s29 = scalar_lea.sflag [#allocation7], %s550_s14  ;;  %s2933_s5 = int_to_ptr.vmem [resolvable:$true] %s561_s5 }
  0xb7   : > { %p2471_p8 = pneg %p2937_p11 }
  0xba   : > { %s2931_s3 = scalar_lea.hbm %s3232_s22, %s1951_s19  ;;  %s2474_s23 = scalar_lea.hbm %s3232_s22, 512 }
  0xbb   : > { %s2469_s21 = scalar_lea.hbm %s2931_s3, 256  ;;  %p2475_p13 = scmp.lt.u32.totalorder %s2931_s3, %s3232_s22 }
  0xbc   : > { %p2470_p12 = scmp.ne.s32.totalorder %s2931_s3, %s2469_s21  ;;  %p2476_p0 = scmp.lt.u32.totalorder %s2474_s23, %s2469_s21 }
  0xbd   : > { %p2478_p5 = scmp.lt.u32.totalorder %s2469_s21, %s2931_s3 }
  0xbe   : > { %p2472_p1 = pnand %p2471_p8, %p2470_p12  ;;  %p2477_p2 = por %p2476_p0, %p2475_p13 }
  0xc0   : > { %p2473_p3 = pneg %p2472_p1  ;;  %p2479_p7 = por %p2478_p5, %p2477_p2 }
  0xc2   : > { %p2480_p9 = pnand %p2479_p7, %p2473_p3 }
  0xc4   : > { %2483 = shalt.err (!%p2480_p9)
}
  0xc5   : > { %s2484_s14 = scalar_lea.vmem %s2933_s5, 256  ;;  %s2597_s16 = smov [#allocation6]  }
  0xc6   : > { %p2485_p12 = scmp.ne.s32.totalorder %s2933_s5, %s2484_s14  ;;  %s2489_s19 = sshll.u32 %s2597_s16, 4  ;;  %s2490_s19 = int_to_ptr.vmem [resolvable:$false] %s2489_s19 }
  0xc7   : > { %s2491_s28 = scalar_lea.vmem %s2490_s19, 512  ;;  %p2492_p4 = scmp.lt.s32.totalorder %s2933_s5, %s2490_s19 }
  0xc8   : > { %p2487_p1 = pnand %p2485_p12, %p2471_p8  ;;  %p2493_p13 = scmp.lt.s32.totalorder %s2491_s28, %s2484_s14 }
  0xca   : > { %p2488_p10 = pneg %p2487_p1  ;;  %p2494_p0 = por %p2493_p13, %p2492_p4 }
  0xcc   : > { %p2495_p2 = pnand %p2494_p0, %p2488_p10 }
  0xce   : > { %2498 = shalt.err (!%p2495_p2)
}
  0xcf   : > { %s3234_s21 = smov 128   ;;  %p3235_p8 = scmp.ne.s32.totalorder %s3220_s30, 0 }
  0xd0   : > { %2140 = dma.hbm_to_vmem [thread:$0]  (!%p2937_p11), %s2931_s3, 256, %s2933_s5, %s2941_s29, %s3234_s21, %s3234_s21, %s2593_s8  }
  0xd1   : > { %573 = sbr.rel (%p3235_p8) target bundleno = 2244 (0x8c4), region = 88  ;;  %s2975_s23 = sand.u32 (!%p3235_p8), 1, %s2573_s25  }
  0xd2   : > { %s1863_s1 = sshll.u32 (!%p3235_p8), %s2975_s23, 4  ;;  %s576_s14 = scalar_lea.sflag (!%p3235_p8), [#allocation7], %s2975_s23 }
  0xd3   : > { %s579_s11 = scalar_lea.vmem (!%p3235_p8), [#allocation6], %s1863_s1 }
  0xd8   : > { %2548 = dma.done.wait (%p2912_p6), %s576_s14, 256  }
  0xd9   : > { %2550 = vsyncadd (%p2912_p6), %s576_s14, 4294967040  ;;  %p3236_p4 = scmp.eq.s32.totalorder %s2720_s0, 0 }
  0xdb   : > { %2552 = dma.done.wait (%p3236_p4), [#allocation10], 2048   ;;  %p3237_p10 = pmov %p3236_p4 }
  0xdc   : > { %p3238_p11 = pmov %p3236_p4 }
  0xdd   : > { %2554 = vsyncadd (%p3237_p10), [#allocation10], 4294965248 }
  0xde   : > { %2556 = dma.done.wait (%p3238_p11), [#allocation13], 2048   ;;  %p3239_p3 = pmov %p3236_p4 }
  0xe0   : > { %2558 = vsyncadd (%p3239_p3), [#allocation13], 4294965248  ;;  %p3240_p5 = pmov %p3239_p3 }
  0xe1   : > { %p3241_p7 = pmov %p3239_p3 }
  0xe2   : > { %2560 = dma.done.wait (%p3240_p5), [#allocation16], 4096  }
  0xe3   : > { %2562 = vsyncadd (%p3241_p7), [#allocation16], 4294963200  ;;  %v2598_v0 = vmov 0.0   ;;  %v3001_v1 = vld [vmem:[%s579_s11] sm:$0xff]  ;;  %v3003_v2 = vld [vmem:[%s579_s11 + $0x8] sm:$0xff]  ;;  %vm2599_vm0 = vmmov 0  }
  0xe4   : > { %2010 = vmatprep.subr.bf16.mxu0 %v2598_v0  ;;  %1094 = vst [vmem:[#allocation5] sm:$0xff] %v2598_v0  ;;  %1095 = vst [vmem:[#allocation5 + $0x8] sm:$0xff] %v2598_v0  ;;  %2030 = vmatprep.subr.bf16.mxu1 %v2598_v0  ;;  %v666_v3 = vmul.f32 %v3001_v1, %v3001_v1  ;;  %v2219_v4 = vld [vmem:[#allocation9] sm:$0xff]   ;;  %v667_v5 = vmul.f32 %v3003_v2, %v3003_v2  ;;  %v2221_v7 = vld [vmem:[#allocation9 + $0x8] sm:$0xff]   ;;  %s3242_s8 = sld [smem:[#allocation25_spill]]  ;;  %vm1040_vm1 = vcmask 261120  }
  0xe5   : > { %659 = vadd.xlane.f32.xlu0 %v3001_v1  ;;  %2011 = vmatpush3.bf16.msra.mxu0 %v2219_v4  ;;  %v2220_v6 = vld [vmem:[#allocation11] sm:$0xff]   ;;  %v2222_v8 = vld [vmem:[#allocation11 + $0x8] sm:$0xff]   ;;  %v2223_v9 = vld [vmem:[#allocation9 + $0x10] sm:$0xff]   ;;  %s2600_s21 = smov 96   ;;  %s2601_s14 = smov 64  }
  0xe6   : > { %668 = vadd.xlane.f32.xlu1 %v666_v3  ;;  %2012 = vmatprep.subr.bf16.mxu0 %v2598_v0  ;;  %v2224_v10 = vld [vmem:[#allocation11 + $0x10] sm:$0xff]   ;;  %v2225_v11 = vld [vmem:[#allocation9 + $0x18] sm:$0xff]   ;;  %v2227_v13 = vld [vmem:[#allocation9 + $0x20] sm:$0xff]   ;;  %s2602_s11 = smov 32   ;;  %s3070_s17 = scalar_lea.vmem [#allocation18], %s1863_s1 }
  0xe7   : > { %2031 = vmatpush3.bf16.msra.mxu1 %v2220_v6  ;;  %v2226_v12 = vld [vmem:[#allocation11 + $0x18] sm:$0xff]   ;;  %v2228_v14 = vld [vmem:[#allocation11 + $0x20] sm:$0xff]   ;;  %2026 = vmatprep.mubr.msk.bf16.mxu0 %vm2599_vm0, %v2598_v0  ;;  %v2229_v15 = vld [vmem:[#allocation9 + $0x28] sm:$0xff]   ;;  %s3072_s3 = smov 0  }
  0xe8   : > { %2032 = vmatprep.subr.bf16.mxu1 %v2598_v0  ;;  %2046 = vmatprep.mubr.msk.bf16.mxu1 %vm2599_vm0, %v2598_v0  ;;  %v2230_v16 = vld [vmem:[#allocation11 + $0x28] sm:$0xff]   ;;  %v2231_v17 = vld [vmem:[#allocation9 + $0x30] sm:$0xff]   ;;  %v2233_v19 = vld [vmem:[#allocation9 + $0x38] sm:$0xff]  }
  0xe9   : > { %661 = vadd.xlane.f32.xlu0 %v3003_v2  ;;  %2013 = vmatpush3.bf16.msra.mxu0 %v2221_v7  ;;  %v2232_v18 = vld [vmem:[#allocation11 + $0x30] sm:$0xff]   ;;  %v2234_v20 = vld [vmem:[#allocation11 + $0x38] sm:$0xff]   ;;  %v2235_v47 = vld [vmem:[#allocation12] sm:$0xff]  }
  0xea   : > { %670 = vadd.xlane.f32.xlu1 %v667_v5  ;;  %2014 = vmatprep.subr.bf16.mxu0 %v2598_v0  ;;  %v1871_v38 = vld [vmem:[%s3242_s8] ss:$0 sm:$0xff]  ;;  %v2236_v49 = vld [vmem:[#allocation12 + $0x8] sm:$0xff]   ;;  %v2238_v51 = vld [vmem:[#allocation12 + $0x18] sm:$0xff]   ;;  %s3243_s8 = sld [smem:[#allocation28_spill]] }
  0xeb   : > { %2033 = vmatpush3.bf16.msra.mxu1 %v2222_v8  ;;  %v1872_v43 = vld [vmem:[%s3183_s2] ss:$0 sm:$0xff]  ;;  %v2239_v52 = vld [vmem:[#allocation12 + $0x20] sm:$0xff]   ;;  %v2240_v53 = vld [vmem:[#allocation12 + $0x28] sm:$0xff]  }
  0xec   : > { %2034 = vmatprep.subr.bf16.mxu1 %v2598_v0  ;;  %v2237_v50 = vld [vmem:[#allocation12 + $0x10] sm:$0xff]   ;;  %v2242_v55 = vld [vmem:[#allocation12 + $0x38] sm:$0xff]  }
  0xed   : > { %2015 = vmatpush3.bf16.msra.mxu0 %v2223_v9  ;;  %v2241_v54 = vld [vmem:[#allocation12 + $0x30] sm:$0xff]  }
  0xee   : > { %2016 = vmatprep.subr.bf16.mxu0 %v2598_v0  ;;  %v1873_v56 = vld [vmem:[%s3187_s6] ss:$0 sm:$0xff] }
  0xef   : > { %2035 = vmatpush3.bf16.msra.mxu1 %v2224_v10  ;;  %v1882_v58 = vld [vmem:[%s3188_s7] ss:$0 sm:$0xff] }
  0xf0   : > { %2036 = vmatprep.subr.bf16.mxu1 %v2598_v0  ;;  %v1891_v10 = vld [vmem:[%s3243_s8] ss:$0 sm:$0xff] }
  0xf1   : > { %2017 = vmatpush3.bf16.msra.mxu0 %v2225_v11 }
  0xf2   : > { %2018 = vmatprep.subr.bf16.mxu0 %v2598_v0 }
  0xf3   : > { %2037 = vmatpush3.bf16.msra.mxu1 %v2226_v12 }
  0xf4   : > { %2038 = vmatprep.subr.bf16.mxu1 %v2598_v0 }
  0xf5   : > { %2019 = vmatpush3.bf16.msra.mxu0 %v2227_v13 }
  0xf6   : > { %2020 = vmatprep.subr.bf16.mxu0 %v2598_v0 }
  0xf7   : > { %2039 = vmatpush3.bf16.msra.mxu1 %v2228_v14 }
  0xf8   : > { %2040 = vmatprep.subr.bf16.mxu1 %v2598_v0 }
  0xf9   : > { %2021 = vmatpush3.bf16.msra.mxu0 %v2229_v15 }
  0xfa   : > { %2022 = vmatprep.subr.bf16.mxu0 %v2598_v0 }
  0xfb   : > { %2041 = vmatpush3.bf16.msra.mxu1 %v2230_v16 }
  0xfc   : > { %2042 = vmatprep.subr.bf16.mxu1 %v2598_v0 }
  0xfd   : > { %2023 = vmatpush3.bf16.msra.mxu0 %v2231_v17 }
  0xfe   : > { %2024 = vmatprep.subr.bf16.mxu0 %v2598_v0 }
  0xff   : > { %2043 = vmatpush3.bf16.msra.mxu1 %v2232_v18 }
 0x100   : > { %2044 = vmatprep.subr.bf16.mxu1 %v2598_v0 }
 0x101   : > { %2025 = vmatpush3.bf16.msra.mxu0 %v2233_v19 }
 0x102   : > { %2050 = vmatprep.subr.bf16.mxu0 %v2598_v0 }
 0x103   : > { %2045 = vmatpush3.bf16.msra.mxu1 %v2234_v20 }
 0x172   : > { %v660_v21 = vpop.xlane.xlu0 %659 }
 0x173   : > { %v664_v22 = vmul.f32 0.0078125, %v660_v21  ;;  %v669_v23 = vpop.xlane.xlu1 %668 }
 0x174   : > { %v672_v25 = vmul.f32 0.0078125, %v669_v23 }
 0x175   : > { %v674_v24 = vmul.f32 %v664_v22, %v664_v22  ;;  %v678_v35 = vsub.f32 %v3001_v1, %v664_v22 }
 0x176   : > { %v662_v26 = vpop.xlane.xlu0 %661 }
 0x177   : > { %v676_v27 = vsub.f32 %v672_v25, %v674_v24  ;;  %v665_v28 = vmul.f32 0.0078125, %v662_v26  ;;  %v671_v29 = vpop.xlane.xlu1 %670 }
 0x178   : > { %v673_v32 = vmul.f32 0.0078125, %v671_v29 }
 0x179   : > { %v680_v30 = vadd.f32 1e-05, %v676_v27  ;;  %v675_v31 = vmul.f32 %v665_v28, %v665_v28  ;;  %v679_v39 = vsub.f32 %v3003_v2, %v665_v28 }
 0x17b   : > { %2243 = vrsqrt.f32 %v680_v30  ;;  %v677_v33 = vsub.f32 %v673_v32, %v675_v31 }
 0x17d   : > { %v681_v34 = vadd.f32 1e-05, %v677_v33 }
 0x17f   : > { %2245 = vrsqrt.f32 %v681_v34 }
 0x185   : > { %v2244_v36 = vpop.eup %2243 }
 0x186   : > { %v684_v37 = vmul.f32 %v2244_v36, %v678_v35 }
 0x188   : > { %v692_v42 = vmul.f32 %v1871_v38, %v684_v37 }
 0x189   : > { %v2246_v40 = vpop.eup %2245 }
 0x18a   : > { %v685_v41 = vmul.f32 %v2246_v40, %v679_v39  ;;  %v700_v45 = vadd.f32 %v1872_v43, %v692_v42 }
 0x18c   : > { %v693_v44 = vmul.f32 %v1871_v38, %v685_v41 }
 0x18e   : > { %v701_v46 = vadd.f32 %v1872_v43, %v693_v44 }
 0x190   : > { %v702_v48 = vpack.c.bf16 %v701_v46, %v700_v45 }
 0x192   : > { %2027 = vmatmul.mubr.bf16.vlgmr.msra.gmra.mrb[0].mxu0 %v702_v48  ;;  %2047 = vmatmul.mubr.bf16.vlgmr.msra.gmra.mrb[0].mxu1 %v702_v48 }
 0x193   : > { %2051 = vmatpush3.bf16.msra.mxu0 %v2235_v47  ;;  %2066 = vmatprep.mubr.msk.bf16.mxu0 %vm2599_vm0, %v2598_v0 }
 0x194   : > { %2052 = vmatprep.subr.bf16.mxu0 %v2598_v0 }
 0x197   : > { %2053 = vmatpush3.bf16.msra.mxu0 %v2236_v49 }
 0x198   : > { %2054 = vmatprep.subr.bf16.mxu0 %v2598_v0 }
 0x19b   : > { %2055 = vmatpush3.bf16.msra.mxu0 %v2237_v50 }
 0x19c   : > { %2056 = vmatprep.subr.bf16.mxu0 %v2598_v0 }
 0x19f   : > { %2057 = vmatpush3.bf16.msra.mxu0 %v2238_v51 }
 0x1a0   : > { %2058 = vmatprep.subr.bf16.mxu0 %v2598_v0 }
 0x1a3   : > { %2059 = vmatpush3.bf16.msra.mxu0 %v2239_v52 }
 0x1a4   : > { %2060 = vmatprep.subr.bf16.mxu0 %v2598_v0 }
 0x1a7   : > { %2061 = vmatpush3.bf16.msra.mxu0 %v2240_v53 }
 0x1a8   : > { %2062 = vmatprep.subr.bf16.mxu0 %v2598_v0 }
 0x1ab   : > { %2063 = vmatpush3.bf16.msra.mxu0 %v2241_v54 }
 0x1ac   : > { %2064 = vmatprep.subr.bf16.mxu0 %v2598_v0 }
 0x1af   : > { %2065 = vmatpush3.bf16.msra.mxu0 %v2242_v55 }
 0x1b2   : > { %2067 = vmatmul.mubr.bf16.vlgmr.msra.gmra.mrb[4].mxu0 %v702_v48 }
 0x265   : > { %v808_v57 = vpop.f32.mrb[0].mxu0  ;;  %v920_v59 = vpop.f32.mrb[0].mxu1 }
 0x266   : > { %v2028_v60 = vpop.f32.mrb[1].mxu0  ;;  %v2048_v61 = vpop.f32.mrb[1].mxu1  ;;  %v809_v3 = vadd.f32 %v1873_v56, %v808_v57  ;;  %v921_v4 = vadd.f32 %v1882_v58, %v920_v59 }
 0x267   : > { %v811_v62 = vpop.f32.mrb[2].mxu0  ;;  %v923_v63 = vpop.f32.mrb[2].mxu1 }
 0x268   : > { %v812_v5 = vadd.f32 %v1873_v56, %v811_v62  ;;  %v924_v0 = vadd.f32 %v1882_v58, %v923_v63  ;;  %v2029_v6 = vpop.f32.mrb[3].mxu0  ;;  %v2049_v7 = vpop.f32.mrb[3].mxu1 }
 0x26a   : > { %v1039_v8 = vpack.c.bf16 %v812_v5, %v809_v3  ;;  %v1042_v9 = vpack.c.bf16 %v924_v0, %v921_v4 }
 0x26c   : > { %1041 = vst.msk [vmem:[#allocation2] sm:$0xff] %vm1040_vm1, %v1039_v8  ;;  %1043 = vst.msk [vmem:[#allocation3] sm:$0xff] %vm1040_vm1, %v1042_v9  ;;  %1053 = vrot.lane.b32.xlu1 %v1042_v9, %s2600_s21  ;;  %1047 = vrot.lane.b32.xlu0 %v1039_v8, %s2600_s21 }
 0x270   : > { %1064 = vrot.lane.b32.xlu1 %v1039_v8, %s2601_s14  ;;  %1069 = vrot.lane.b32.xlu0 %v1042_v9, %s2601_s14 }
 0x274   : > { %1079 = vrot.lane.b32.xlu0 %v1039_v8, %s2602_s11 }
 0x285   : > { %v1032_v11 = vpop.f32.mrb[4].mxu0 }
 0x286   : > { %v2068_v12 = vpop.f32.mrb[5].mxu0  ;;  %v1033_v14 = vadd.f32 %v1891_v10, %v1032_v11 }
 0x287   : > { %v1035_v13 = vpop.f32.mrb[6].mxu0 }
 0x288   : > { %v1036_v15 = vadd.f32 %v1891_v10, %v1035_v13  ;;  %v2069_v16 = vpop.f32.mrb[7].mxu0 }
 0x28a   : > { %v1044_v17 = vpack.c.bf16 %v1036_v15, %v1033_v14 }
 0x28c   : > { %1045 = vst.msk [vmem:[#allocation4] sm:$0xff] %vm1040_vm1, %v1044_v17  ;;  %1089 = vrot.lane.b32.xlu0 %v1044_v17, %s2602_s11  ;;  %1059 = vrot.lane.b32.xlu1 %v1044_v17, %s2600_s21 }
 0x290   : > { %1074 = vrot.lane.b32.xlu1 %v1044_v17, %s2601_s14 }
 0x294   : > { %1084 = vrot.lane.b32.xlu1 %v1042_v9, %s2602_s11 }
 0x2de   : > { %v1054_v18 = vpop.permute.xlu1 %1053  ;;  %v1048_v19 = vpop.permute.xlu0 %1047 }
 0x2df   : > { %1057 = vst.msk [vmem:[#allocation3 + $0x8] sm:$0xff] %vm1040_vm1, %v1054_v18  ;;  %1051 = vst.msk [vmem:[#allocation2 + $0x8] sm:$0xff] %vm1040_vm1, %v1048_v19 }
 0x2e2   : > { %v1065_v20 = vpop.permute.xlu1 %1064  ;;  %v1070_v21 = vpop.permute.xlu0 %1069 }
 0x2e3   : > { %1068 = vst.msk [vmem:[#allocation2 + $0x10] sm:$0xff] %vm1040_vm1, %v1065_v20  ;;  %1073 = vst.msk [vmem:[#allocation3 + $0x10] sm:$0xff] %vm1040_vm1, %v1070_v21 }
 0x2e6   : > { %v1080_v22 = vpop.permute.xlu0 %1079 }
 0x2e7   : > { %1083 = vst.msk [vmem:[#allocation2 + $0x18] sm:$0xff] %vm1040_vm1, %v1080_v22 }
 0x2fe   : > { %v1090_v23 = vpop.permute.xlu0 %1089  ;;  %v1060_v24 = vpop.permute.xlu1 %1059 }
 0x2ff   : > { %1093 = vst.msk [vmem:[#allocation4 + $0x18] sm:$0xff] %vm1040_vm1, %v1090_v23  ;;  %1063 = vst.msk [vmem:[#allocation4 + $0x8] sm:$0xff] %vm1040_vm1, %v1060_v24 }
 0x302   : > { %v1075_v25 = vpop.permute.xlu1 %1074 }
 0x303   : > { %1078 = vst.msk [vmem:[#allocation4 + $0x10] sm:$0xff] %vm1040_vm1, %v1075_v25 }
 0x306   : > { %v1085_v26 = vpop.permute.xlu1 %1084 }
 0x307   : > { %1088 = vst.msk [vmem:[#allocation3 + $0x18] sm:$0xff] %vm1040_vm1, %v1085_v26 }
 0x308 LB: >> { %v2603_v27 = vmov 0.0   ;;  %vm2604_vm2 = vmmov 0   ;;  %s1900_s5 = sshll.u32 %s2585_s3, 3  ;;  %s1952_s16 = sshll.u32 %s2585_s3, 4  ;;  %vm1160_vm3 = vcmask 130048   ;;  %v1228_v3 = vld [vmem:[#allocation5] sm:$0xff]  ;;  %s2585_s3 = sphi %s3072_s3, %s1101_s3  }
 0x309   : >> { %2070 = vmatprep.subr.bf16.mxu0 %v2603_v27  ;;  %2072 = vmatprep.mubr.msk.bf16.mxu0 %vm2604_vm2, %v2603_v27  ;;  %s1106_s1 = scalar_lea.vmem [#allocation3], %s1900_s5  ;;  %s3081_s19 = scalar_lea.vmem [#allocation14], %s1952_s16  ;;  %v1229_v5 = vld [vmem:[#allocation5 + $0x8] sm:$0xff] }
 0x30a   : >> { %2076 = vmatprep.subr.bf16.mxu1 %v2603_v27  ;;  %2078 = vmatprep.mubr.msk.bf16.mxu1 %vm2604_vm2, %v2603_v27  ;;  %s1103_s28 = scalar_lea.vmem [#allocation2], %s1900_s5  ;;  %s1109_s21 = scalar_lea.vmem [#allocation4], %s1900_s5  ;;  %v2247_v51 = vld [vmem:[%s3081_s19] sm:$0xff]   ;;  %v2248_v52 = vld [vmem:[%s3081_s19 + $0x8] sm:$0xff]  }
 0x30b   : >> { %v1104_v30 = vld [vmem:[%s1103_s28] sm:$0xff]  ;;  %s1101_s3 = sadd.s32 1, %s2585_s3  }
 0x30c   : >> { %v1110_v39 = vld [vmem:[%s1109_s21] sm:$0xff]  ;;  %p1098_p6 = scmp.ge.s32.totalorder %s1101_s3, 4  }
 0x30d   : >> { %2077 = vmatpush3.bf16.msra.mxu1 %v1110_v39  ;;  %s3244_s30 = sld [smem:[#allocation29_spill]] (%p1098_p6)  ;;  %v2257_v15 = vld [vmem:[#allocation15 + $0x4] ss:$8 sps:$4 sm:$0xff] (%p1098_p6)   ;;  %v2262_v20 = vld [vmem:[#allocation15 + $0x10] ss:$8 sps:$4 sm:$0xff] (%p1098_p6)   ;;  %s3245_s3 = sld [smem:[#allocation30_spill]] (%p1098_p6) }
 0x30e   : >> { %v1107_v28 = vld [vmem:[%s1106_s1] sm:$0xff]  ;;  %2082 = vmatprep.subr.bf16.mxu1 %v2603_v27  ;;  %v2263_v21 = vld [vmem:[#allocation15 + $0x24] ss:$8 sps:$4 sm:$0xff] (%p1098_p6)   ;;  %v2265_v22 = vld [vmem:[#allocation15 + $0x20] ss:$8 sps:$4 sm:$0xff] (%p1098_p6)   ;;  %s3246_s1 = sld [smem:[#allocation31_spill]] (%p1098_p6) }
 0x30f   : >> { %v1115_v29 = vsel %vm1040_vm1, %v1107_v28, 0  ;;  %v2266_v23 = vld [vmem:[#allocation15 + $0x34] ss:$8 sps:$4 sm:$0xff] (%p1098_p6)   ;;  %v2268_v24 = vld [vmem:[#allocation15 + $0x30] ss:$8 sps:$4 sm:$0xff] (%p1098_p6)   ;;  %v2605_v28 = vmov (%p1098_p6), 0  }
 0x310   : >> { %2071 = vmatpush3.bf16.xpose.msra.mxu0 %v1115_v29  ;;  %v2269_v25 = vld [vmem:[#allocation15 + $0x44] ss:$8 sps:$4 sm:$0xff] (%p1098_p6)   ;;  %v2271_v26 = vld [vmem:[#allocation15 + $0x40] ss:$8 sps:$4 sm:$0xff] (%p1098_p6)   ;;  %v2274_v29 = vld [vmem:[#allocation15 + $0x50] ss:$8 sps:$4 sm:$0xff] (%p1098_p6)  }
 0x311   : > { %1464 = vmatprep.subr.bf16.mxu0 (%p1098_p6), %v2257_v15  ;;  %v2286_v39 = vld [vmem:[#allocation17 + $0x10] sm:$0xff] (%p1098_p6)   ;;  %v1374_v15 = vlaneseq (%p1098_p6)  ;;  %s3247_s21 = sld [smem:[#allocation32_spill]] (%p1098_p6)  ;;  %s1953_s29 = sshll.u32 (%p1098_p6), %s2720_s0, 8 }
 0x312   : > { %s1707_s8 = sshll.u32 (%p1098_p6), %s3070_s17, 4  ;;  %s3249_s16 = sld [smem:[#allocation34_spill]] (%p1098_p6)  ;;  %s3134_s8 = int_to_ptr.vmem [resolvable:$true] %s1707_s8 }
 0x313   : > { %v1910_v11 = vld [vmem:[%s3244_s30] ss:$0 sm:$0xff] (%p1098_p6)  ;;  %s3248_s30 = sld [smem:[#allocation33_spill]] (%p1098_p6)  ;;  %s1694_s19 = scalar_lea.sflag (%p1098_p6), [#allocation8], %s2975_s23 }
 0x314   : > { %s2499_s0 = scalar_lea.vmem (%p1098_p6), %s3134_s8, 256  ;;  %p3250_p12 = scmp.ne.s32.totalorder (%p1098_p6), %s3230_s10, 0 }
 0x315   : > { %p2500_p9 = scmp.ne.s32.totalorder (%p1098_p6), %s3134_s8, %s2499_s0  ;;  %s2606_s28 = smov (%p1098_p6), [#allocation18]  }
 0x317   : >> { %2073 = vmatmul.mubr.msk.bf16.vlgmr.msra.gmra.mrb[0].mxu0 %vm1040_vm1, %v1104_v30  ;;  %v2275_v30 = vld [vmem:[#allocation15 + $0x64] ss:$8 sps:$4 sm:$0xff] (%p1098_p6)   ;;  %p2501_p1 = pnand (%p1098_p6), %p2500_p9, %p3250_p12 }
 0x318   : > { %1496 = vmatprep.mubr.bf16.mxu0 (%p1098_p6), %v2605_v28 }
 0x319   : > { %p2502_p13 = pneg (%p1098_p6), %p2501_p1 }
 0x3ea   : >> { %v1151_v31 = vpop.f32.mrb[0].mxu0 }
 0x3eb   : >> { %v1158_v32 = vmul.f32 0.17677669, %v1151_v31  ;;  %v2074_v33 = vpop.f32.mrb[1].mxu0  ;;  %v2277_v31 = vld [vmem:[#allocation15 + $0x60] ss:$8 sps:$4 sm:$0xff] (%p1098_p6)  }
 0x3ec   : >> { %v1154_v34 = vpop.f32.mrb[2].mxu0  ;;  %v2280_v33 = vld [vmem:[#allocation15 + $0x70] ss:$8 sps:$4 sm:$0xff] (%p1098_p6)  }
 0x3ed   : >> { %v1159_v35 = vmul.f32 0.17677669, %v1154_v34  ;;  %v2075_v36 = vpop.f32.mrb[3].mxu0  ;;  %v1161_v37 = vsel %vm1160_vm3, %v1158_v32, -inf  ;;  %v2281_v34 = vld [vmem:[#allocation17 + $0x40] sm:$0xff] (%p1098_p6)  }
 0x3ee   : >> { %1162 = vmax.xlane.f32.xlu0 %v1161_v37  ;;  %v2283_v36 = vld [vmem:[#allocation17 + $0x48] sm:$0xff] (%p1098_p6)  }
 0x3ef   : >> { %v1164_v38 = vsel %vm1160_vm3, %v1159_v35, -inf  ;;  %v2284_v37 = vld [vmem:[#allocation17 + $0x8] sm:$0xff] (%p1098_p6)  }
 0x3f2   : >> { %1165 = vmax.xlane.f32.xlu0 %v1164_v38  ;;  %v2285_v38 = vld [vmem:[#allocation17 + $0x50] sm:$0xff] (%p1098_p6)  }
 0x47b   : >> { %v1163_v40 = vpop.xlane.xlu0 %1162 }
 0x47c   : >> { %v1167_v41 = vsub.f32 %v1158_v32, %v1163_v40  ;;  %v2278_v32 = vld [vmem:[#allocation15 + $0x74] ss:$8 sps:$4 sm:$0xff] (%p1098_p6)  }
 0x47d   : > { %v2287_v40 = vld [vmem:[#allocation17 + $0x58] sm:$0xff] (%p1098_p6)  }
 0x47e   : >> { %v1169_v42 = vmul.f32 1.442695, %v1167_v41  ;;  %v2288_v41 = vld [vmem:[#allocation17 + $0x18] sm:$0xff] (%p1098_p6)  }
 0x47f   : >> { %v1166_v43 = vpop.xlane.xlu0 %1165 }
 0x480   : >> { %2249 = vpow2.f32 %v1169_v42  ;;  %v1168_v44 = vsub.f32 %v1159_v35, %v1166_v43  ;;  %v2282_v35 = vld [vmem:[#allocation17] sm:$0xff] (%p1098_p6)  }
 0x481   : > { %v2289_v42 = vld [vmem:[#allocation17 + $0x60] sm:$0xff] (%p1098_p6)  }
 0x482   : >> { %v1171_v45 = vmul.f32 1.442695, %v1168_v44  ;;  %v2290_v43 = vld [vmem:[#allocation17 + $0x20] sm:$0xff] (%p1098_p6)   ;;  %v2291_v44 = vld [vmem:[#allocation17 + $0x68] sm:$0xff] (%p1098_p6)  }
 0x484   : >> { %2251 = vpow2.f32 %v1171_v45 }
 0x48a   : >> { %v2250_v46 = vpop.eup %2249 }
 0x48b   : >> { %v1173_v47 = vsel %vm1160_vm3, %v2250_v46, 0.0 }
 0x48c   : >> { %1174 = vadd.xlane.f32.xlu1 %v1173_v47 }
 0x48e   : >> { %v2252_v48 = vpop.eup %2251 }
 0x48f   : >> { %v1176_v49 = vsel %vm1160_vm3, %v2252_v48, 0.0  ;;  %v1179_v50 = vpack.c.bf16 %v2252_v48, %v2250_v46 }
 0x490   : >> { %1177 = vadd.xlane.f32.xlu1 %v1176_v49 }
 0x491   : >> { %2079 = vmatmul.mubr.msk.bf16.vlgmr.msra.gmra.mrb[0].mxu1 %vm1160_vm3, %v1179_v50 }
 0x492   : >> { %2086 = vmatprep.mubr.msk.bf16.mxu1 %vm2604_vm2, %v2603_v27  ;;  %2083 = vmatpush3.bf16.msra.mxu1 %v2247_v51 }
 0x493   : >> { %2084 = vmatprep.subr.bf16.mxu1 %v2603_v27  ;;  %v2272_v27 = vld [vmem:[#allocation15 + $0x54] ss:$8 sps:$4 sm:$0xff] (%p1098_p6)  }
 0x496   : >> { %2085 = vmatpush3.bf16.msra.mxu1 %v2248_v52 }
 0x497   : > { %1988 = vmatprep.subr.bf16.mxu1 (%p1098_p6), %v2281_v34 }
 0x519   : >> { %v1175_v53 = vpop.xlane.xlu1 %1174 }
 0x51a   : >> { %2253 = vrcp.f32 %v1175_v53 }
 0x51d   : >> { %v1178_v54 = vpop.xlane.xlu1 %1177 }
 0x51e   : >> { %2255 = vrcp.f32 %v1178_v54 }
 0x524   : >> { %v2254_v56 = vpop.eup %2253 }
 0x528   : >> { %v2256_v58 = vpop.eup %2255 }
 0x564   : >> { %v1217_v55 = vpop.f32.mrb[0].mxu1 }
 0x565   : >> { %v2080_v57 = vpop.f32.mrb[1].mxu1  ;;  %v1226_v60 = vmul.f32 %v2254_v56, %v1217_v55 }
 0x566   : >> { %v1220_v59 = vpop.f32.mrb[2].mxu1 }
 0x567   : >> { %v1227_v61 = vmul.f32 %v2256_v58, %v1220_v59  ;;  %v2081_v62 = vpop.f32.mrb[3].mxu1 }
 0x568   : > { %v1911_v62 = vld [vmem:[%s3245_s3] ss:$0 sm:$0xff] (%p1098_p6) }
 0x569   : >> { %v1230_v63 = vpack.c.bf16 %v1227_v61, %v1226_v60 }
 0x56b   : >> { %2087 = vmatmul.mubr.msk.bf16.vlgmr.msra.gmra.mrb[4].mxu1 %vm1040_vm1, %v1230_v63 }
 0x56c   : > { %1989 = vmatpush3.bf16.msra.mxu1 (%p1098_p6), %v2282_v35 }
 0x56d   : > { %1990 = vmatprep.subr.bf16.mxu1 (%p1098_p6), %v2283_v36 }
 0x570   : > { %1991 = vmatpush3.bf16.msra.mxu1 (%p1098_p6), %v2284_v37  ;;  %v1929_v37 = vld [vmem:[%s3248_s30] ss:$0 sm:$0xff] (%p1098_p6) }
 0x571   : > { %1992 = vmatprep.subr.bf16.mxu1 (%p1098_p6), %v2285_v38 }
 0x574   : > { %1993 = vmatpush3.bf16.msra.mxu1 (%p1098_p6), %v2286_v39 }
 0x575   : > { %1994 = vmatprep.subr.bf16.mxu1 (%p1098_p6), %v2287_v40 }
 0x578   : > { %1995 = vmatpush3.bf16.msra.mxu1 (%p1098_p6), %v2288_v41 }
 0x579   : > { %1996 = vmatprep.subr.bf16.mxu1 (%p1098_p6), %v2289_v42 }
 0x57c   : > { %1997 = vmatpush3.bf16.msra.mxu1 (%p1098_p6), %v2290_v43 }
 0x57d   : > { %1998 = vmatprep.subr.bf16.mxu1 (%p1098_p6), %v2291_v44 }
 0x63d   : > { %1100 = sbr.rel (!%p1098_p6) target bundleno = 776 (0x308), region = 177 }
 0x63e   : >> { %v1287_v4 = vpop.f32.mrb[4].mxu1 }
 0x63f   : >> { %v1294_v0 = vadd.f32 %v1287_v4, %v1228_v3  ;;  %v2088_v6 = vpop.f32.mrb[5].mxu1 }
 0x640   : >> { %v1290_v7 = vpop.f32.mrb[6].mxu1 }
 0x641   : >> { %1296 = vst [vmem:[#allocation5] sm:$0xff] %v1294_v0  ;;  %v1295_v8 = vadd.f32 %v1290_v7, %v1229_v5  ;;  %v2089_v9 = vpop.f32.mrb[7].mxu1  ;;  %v1912_v0 = vld [vmem:[%s3246_s1] ss:$0 sm:$0xff] (%p1098_p6)  ;;  %s3132_s1 = scalar_lea.hbm (%p1098_p6), %s3249_s16, %s1953_s29 }
 0x643   : >> { %1297 = vst [vmem:[#allocation5 + $0x8] sm:$0xff] %v1295_v8 }
 0x648   : > { %v1298_v10 = vld [vmem:[#allocation5] sm:$0xff] }
 0x649   : > { %v1300_v13 = vadd.f32 %v1298_v10, %v3001_v1  ;;  %v2259_v1 = vld [vmem:[#allocation15] ss:$8 sps:$4 sm:$0xff]  }
 0x64a   : > { %v1299_v12 = vld [vmem:[#allocation5 + $0x8] sm:$0xff]  ;;  %1465 = vmatpush1.bf16.msra.mxu0 %v2259_v1  ;;  %v2292_v10 = vld [vmem:[#allocation17 + $0x28] sm:$0xff]   ;;  %v1372_v1 = vld [vmem:[%s3247_s21] sm:$0x3]  ;;  %s2503_s21 = sshll.u32 %s2606_s28, 4  ;;  %s2504_s21 = int_to_ptr.vmem [resolvable:$false] %s2503_s21 }
 0x64b   : > { %v1301_v14 = vadd.f32 %v1299_v12, %v3003_v2  ;;  %v3102_v16 = vadd.f32 %v1910_v11, %v1300_v13  ;;  %v2260_v2 = vld [vmem:[#allocation15 + $0x14] ss:$8 sps:$4 sm:$0xff]   ;;  %1999 = vmatpush3.bf16.msra.mxu1 %v2292_v10  ;;  %s2505_s14 = scalar_lea.vmem %s2504_s21, 512  ;;  %p2506_p0 = scmp.lt.s32.totalorder %s3134_s8, %s2504_s21 }
 0x64c   : > { %1466 = vmatprep.subr.bf16.mxu0 %v2260_v2  ;;  %v2294_v12 = vld [vmem:[#allocation17 + $0x30] sm:$0xff]   ;;  %v2295_v13 = vld [vmem:[#allocation17 + $0x78] sm:$0xff]   ;;  %p2507_p2 = scmp.lt.s32.totalorder %s2505_s14, %s2499_s0 }
 0x64d   : > { %v3104_v17 = vadd.f32 %v1910_v11, %v1301_v14  ;;  %1313 = vadd.xlane.f32.xlu0 %v3102_v16  ;;  %v1319_v18 = vmul.f32 %v3102_v16, %v3102_v16  ;;  %v2293_v11 = vld [vmem:[#allocation17 + $0x70] sm:$0xff]   ;;  %v2296_v14 = vld [vmem:[#allocation17 + $0x38] sm:$0xff]  }
 0x64e   : > { %1467 = vmatpush1.bf16.msra.mxu0 %v2262_v20  ;;  %2000 = vmatprep.subr.bf16.mxu1 %v2293_v11  ;;  %p2508_p8 = por %p2507_p2, %p2506_p0 }
 0x64f   : > { %1321 = vadd.xlane.f32.xlu1 %v1319_v18  ;;  %v1320_v19 = vmul.f32 %v3104_v17, %v3104_v17  ;;  %1468 = vmatprep.subr.bf16.mxu0 %v2263_v21  ;;  %v1375_v18 = vshrl.u32 %v1374_v15, 7 }
 0x650   : > { %2001 = vmatpush3.bf16.msra.mxu1 %v2294_v12  ;;  %p2509_p4 = pnand %p2508_p8, %p2502_p13 }
 0x651   : > { %1315 = vadd.xlane.f32.xlu0 %v3104_v17  ;;  %2002 = vmatprep.subr.bf16.mxu1 %v2295_v13  ;;  %v1380_v2 = vsub.s32 1, %v1375_v18 }
 0x652   : > { %1469 = vmatpush1.bf16.msra.mxu0 %v2265_v22 }
 0x653   : > { %1323 = vadd.xlane.f32.xlu1 %v1320_v19  ;;  %1470 = vmatprep.subr.bf16.mxu0 %v2266_v23  ;;  %v1376_v19 = vsub.s32 0, %v1375_v18  ;;  %v1381_v21 = vrot.slane %v1372_v1, %v1380_v2 }
 0x654   : > { %2003 = vmatpush3.bf16.msra.mxu1 %v2296_v14 }
 0x655   : > { %v1377_v20 = vrot.slane %v1372_v1, %v1376_v19 }
 0x656   : > { %1471 = vmatpush1.bf16.msra.mxu0 %v2268_v24 }
 0x657   : > { %1472 = vmatprep.subr.bf16.mxu0 %v2269_v25 }
 0x65a   : > { %1473 = vmatpush1.bf16.msra.mxu0 %v2271_v26 }
 0x65b   : > { %1474 = vmatprep.subr.bf16.mxu0 %v2272_v27 }
 0x65e   : > { %1475 = vmatpush1.bf16.msra.mxu0 %v2274_v29 }
 0x65f   : > { %1476 = vmatprep.subr.bf16.mxu0 %v2275_v30 }
 0x662   : > { %1477 = vmatpush1.bf16.msra.mxu0 %v2277_v31 }
 0x663   : > { %1478 = vmatprep.subr.bf16.mxu0 %v2278_v32 }
 0x666   : > { %1479 = vmatpush1.bf16.msra.mxu0 %v2280_v33 }
 0x6da   : > { %v1314_v45 = vpop.xlane.xlu0 %1313 }
 0x6db   : > { %v1317_v46 = vmul.f32 0.0078125, %v1314_v45 }
 0x6dc   : > { %v1322_v47 = vpop.xlane.xlu1 %1321 }
 0x6dd   : > { %v1327_v48 = vmul.f32 %v1317_v46, %v1317_v46  ;;  %v1325_v49 = vmul.f32 0.0078125, %v1322_v47  ;;  %v1331_v59 = vsub.f32 %v3102_v16, %v1317_v46 }
 0x6de   : > { %v1316_v50 = vpop.xlane.xlu0 %1315 }
 0x6df   : > { %v1329_v51 = vsub.f32 %v1325_v49, %v1327_v48  ;;  %v1318_v52 = vmul.f32 0.0078125, %v1316_v50 }
 0x6e0   : > { %v1324_v53 = vpop.xlane.xlu1 %1323 }
 0x6e1   : > { %v1333_v54 = vadd.f32 1e-05, %v1329_v51  ;;  %v1328_v55 = vmul.f32 %v1318_v52, %v1318_v52  ;;  %v1326_v56 = vmul.f32 0.0078125, %v1324_v53  ;;  %v1332_v63 = vsub.f32 %v3104_v17, %v1318_v52 }
 0x6e3   : > { %2297 = vrsqrt.f32 %v1333_v54  ;;  %v1330_v57 = vsub.f32 %v1326_v56, %v1328_v55 }
 0x6e5   : > { %v1334_v58 = vadd.f32 1e-05, %v1330_v57 }
 0x6e7   : > { %2299 = vrsqrt.f32 %v1334_v58 }
 0x6ed   : > { %v2298_v60 = vpop.eup %2297 }
 0x6ee   : > { %v1337_v61 = vmul.f32 %v2298_v60, %v1331_v59 }
 0x6f0   : > { %v1345_v5 = vmul.f32 %v1911_v62, %v1337_v61 }
 0x6f1   : > { %v2300_v3 = vpop.eup %2299 }
 0x6f2   : > { %v1338_v4 = vmul.f32 %v2300_v3, %v1332_v63  ;;  %v1353_v7 = vadd.f32 %v1912_v0, %v1345_v5 }
 0x6f4   : > { %v1346_v6 = vmul.f32 %v1911_v62, %v1338_v4 }
 0x6f6   : > { %v1354_v8 = vadd.f32 %v1912_v0, %v1346_v6 }
 0x6f8   : > { %v1355_v9 = vpack.c.bf16 %v1354_v8, %v1353_v7 }
 0x6fa   : > { %1497 = vmatmul.mubr.bf16.vlgmr.msra.gmra.mrb[0].mxu0 %v1355_v9 }
 0x7cd   : > { %v1498_v22 = vpop.f32.mrb[0].mxu0 }
 0x7ce   : > { %v1499_v23 = vadd.f32 %v1498_v22, %v1377_v20  ;;  %v1500_v24 = vpop.f32.mrb[1].mxu0 }
 0x7cf   : > { %v1501_v25 = vadd.f32 %v1500_v24, %v1381_v21  ;;  %v1502_v26 = vpop.f32.mrb[2].mxu0 }
 0x7d0   : > { %v1503_v27 = vadd.f32 %v1502_v26, %v1377_v20  ;;  %v1504_v28 = vpop.f32.mrb[3].mxu0  ;;  %v1507_v30 = vmax.f32 %v1499_v23, 0.0 }
 0x7d1   : > { %v1505_v29 = vadd.f32 %v1504_v28, %v1381_v21  ;;  %v1508_v32 = vmax.f32 %v1501_v25, 0.0 }
 0x7d2   : > { %v1509_v31 = vmax.f32 %v1503_v27, 0.0 }
 0x7d3   : > { %v1510_v33 = vmax.f32 %v1505_v29, 0.0 }
 0x7d4   : > { %v1511_v34 = vpack.c.bf16 %v1509_v31, %v1507_v30 }
 0x7d5   : > { %v1512_v35 = vpack.c.bf16 %v1510_v33, %v1508_v32 }
 0x7d7   : > { %1680 = vmatprep.mubr.bf16.mxu1 %v1512_v35 }
 0x7d8   : > { %1681 = vmatmul.mubr.bf16.vlgmr.msra.gmra.mrb[0].mxu1 %v1511_v34 }
 0x8ab   : > { %v2004_v36 = vpop.f32.mrb[0].mxu1 }
 0x8ac   : > { %v2005_v38 = vpop.f32.mrb[1].mxu1 }
 0x8ad   : > { %v2006_v39 = vadd.f32 %v2005_v38, %v2004_v36  ;;  %v2007_v40 = vpop.f32.mrb[2].mxu1 }
 0x8ae   : > { %v2008_v41 = vpop.f32.mrb[3].mxu1 }
 0x8af   : > { %v1683_v42 = vadd.f32 %v2006_v39, %v1929_v37  ;;  %v2009_v43 = vadd.f32 %v2008_v41, %v2007_v40 }
 0x8b1   : > { %v1689_v44 = vadd.f32 %v1683_v42, %v3102_v16  ;;  %v1686_v45 = vadd.f32 %v2009_v43, %v1929_v37 }
 0x8b3   : > { %1691 = vst [vmem:[%s3070_s17] sm:$0xff] %v1689_v44  ;;  %v1690_v46 = vadd.f32 %v1686_v45, %v3104_v17 }
 0x8b5   : > { %1692 = vst [vmem:[%s3070_s17 + $0x8] sm:$0xff] %v1690_v46 }
 0x8b6   : > { %2512 = shalt.err (!%p2509_p4)
}
 0x8b7   : > { %s2513_s17 = scalar_lea.hbm %s3132_s1, 256  ;;  %s2517_s29 = scalar_lea.hbm %s3249_s16, 512 }
 0x8b8   : > { %p2514_p10 = scmp.ne.s32.totalorder %s3132_s1, %s2513_s17  ;;  %p2518_p5 = scmp.lt.u32.totalorder %s3132_s1, %s3249_s16 }
 0x8b9   : > { %p2519_p7 = scmp.lt.u32.totalorder %s2517_s29, %s2513_s17  ;;  %p2521_p9 = scmp.lt.u32.totalorder %s2513_s17, %s3132_s1 }
 0x8ba   : > { %p2515_p11 = pnand %p2514_p10, %p3250_p12 }
 0x8bb   : > { %p2520_p6 = por %p2519_p7, %p2518_p5 }
 0x8bc   : > { %p2516_p3 = pneg %p2515_p11 }
 0x8bd   : > { %p2522_p1 = por %p2521_p9, %p2520_p6 }
 0x8bf   : > { %p2523_p13 = pnand %p2522_p1, %p2516_p3 }
 0x8c1   : > { %2526 = shalt.err (!%p2523_p13)
}
 0x8c2   : > { %s2607_s0 = smov 128   ;;  %s2608_s28 = smov 8  }
 0x8c3   : > { %2116 = dma.vmem_to_hbm [thread:$0]  (%p3250_p12), %s3134_s8, 256, %s3132_s1, %s1694_s19, %s2607_s0, %s2607_s0, %s2608_s28  }
 0x8c4 PF: > { %s1722_s21 = sand.u32 1, %s2569_s24   ;;  %p3251_p0 = scmp.ne.s32.totalorder %s3231_s20, 0 }
 0x8c5   : > { %p3252_p2 = scmp.ge.s32.totalorder %s2581_s27, 2  ;;  %s1723_s14 = scalar_lea.sflag [#allocation8], %s1722_s21 }
 0x8c7   : > { %p2142_p8 = pnand %p3252_p2, %p3251_p0 }
 0x8c9   : > { %2564 = dma.done.wait (!%p2142_p8), %s1723_s14, 256  }
 0x8ca   : > { %2566 = vsyncadd (!%p2142_p8), %s1723_s14, 4294967040  ;;  %p33_p4 = scmp.ge.s32.totalorder %s2893_s18, 4   ;;  %s3253_s24 = smov %s2573_s25 }
 0x8cb   : > { %s3254_s25 = smov %s2577_s26  ;;  %s3255_s26 = smov %s2904_s12 }
 0x8cc   : > { %s3256_s27 = smov %s2893_s18  ;;  %35 = sbr.rel (!%p33_p4) target bundleno = 20 (0x14), region = 188 }
 0x8d3   :  { %1728 = vsyncpa [#allocation7], 1 }
 0x8d4   :  { %1730 = vsyncpa [#allocation7 + $0x1], 1 }
 0x8d5   :  { %1731 = vsyncpa [#allocation10], 1 }
 0x8d6   :  { %1732 = vsyncpa [#allocation13], 1 }
 0x8d7   :  { %1733 = vsyncpa [#allocation16], 1 }
 0x8d8   :  { %1734 = vsyncpa [#allocation8], 1 }
 0x8d9   :  { %1736 = vsyncpa [#allocation8 + $0x1], 1 }

</bundles_post_ra>
